<compile_context>
chip_gen: v5e
topology: v5e:2x2
jax: 0.10.0
libtpu: 0.0.40
codegen_flags: <defaults>
</compile_context>

<pallas_src>
import functools

import jax
import jax.numpy as jnp
from jax.experimental import pallas as pl
from jax.experimental.pallas import tpu as pltpu


# ----------------------------------------------------------------------------
# Fused kernel: one (batch-tile, stream) slice per grid step
# ----------------------------------------------------------------------------

def _layernorm(y, gamma, beta, eps):
    # single-pass variance, clamped to avoid rsqrt of a tiny negative value
    mean = jnp.mean(y, axis=-1, keepdims=True)
    var = jnp.maximum(jnp.mean(y * y, axis=-1, keepdims=True) - mean * mean, 0.0)
    return (y - mean) * jax.lax.rsqrt(var + eps) * gamma + beta


def _encoder_layer_kernel(x_ref, wqkv_ref, bqkv_ref, wo_ref, bo_ref,
                          g1_ref, be1_ref,
                          w1_ref, b1_ref, w2_ref, b2_ref,
                          g2_ref, be2_ref,
                          out_ref, attn_ref, *, n_head, eps):
    _, Bt, S, D = x_ref.shape
    H = n_head
    dk = D // H
    M = Bt * S
    scale = 1.0 / (dk ** 0.5)

    x = x_ref[0]                                 # (Bt, S, D) f32
    xf = x.reshape(M, D)                         # leading-dim merge (S % 8 == 0)
    xb = xf.astype(jnp.bfloat16)

    # --- fused QKV projection: one (M, D) @ (D, 3D) bf16 matmul, f32 accum ---
    qkv = jnp.dot(xb, wqkv_ref[0], preferred_element_type=jnp.float32) + bqkv_ref[0]

    # --- per-head attention, heads unrolled; batch handled as a batched einsum ---
    o = jnp.zeros((M, D), jnp.float32)
    for h in range(H):
        qh = qkv[:, h * dk:(h + 1) * dk].reshape(Bt, S, dk).astype(jnp.bfloat16)
        kh = qkv[:, D + h * dk:D + (h + 1) * dk].reshape(Bt, S, dk).astype(jnp.bfloat16)
        vh = qkv[:, 2 * D + h * dk:2 * D + (h + 1) * dk].reshape(Bt, S, dk).astype(jnp.bfloat16)

        s = jnp.einsum('bid,bjd->bij', qh, kh,
                       preferred_element_type=jnp.float32) * scale
        s = s - jnp.max(s, axis=-1, keepdims=True)
        e = jnp.exp(s)
        p = e / jnp.sum(e, axis=-1, keepdims=True)        # exact normalization

        attn_ref[0, h] = p.astype(attn_ref.dtype)          # one (Bt, S, S) store

        ctx = jnp.einsum('bij,bjd->bid', p.astype(jnp.bfloat16), vh,
                         preferred_element_type=jnp.float32)      # (Bt, S, dk)
        # head-major W_O slice: accumulate output projection, no concat needed
        o = o + jnp.dot(ctx.reshape(M, dk).astype(jnp.bfloat16), wo_ref[0, h],
                        preferred_element_type=jnp.float32)

    # --- output projection bias + residual + LayerNorm ---
    y = o + bo_ref[0] + xf
    y = _layernorm(y, g1_ref[0], be1_ref[0], eps)

    # --- PositionwiseFeedForward: LN(W2(relu(W1 y)) + y) ---
    h1 = jnp.dot(y.astype(jnp.bfloat16), w1_ref[0],
                 preferred_element_type=jnp.float32) + b1_ref[0]
    h1 = jnp.maximum(h1, 0.0)
    z = jnp.dot(h1.astype(jnp.bfloat16), w2_ref[0],
                preferred_element_type=jnp.float32) + b2_ref[0] + y
    z = _layernorm(z, g2_ref[0], be2_ref[0], eps)

    out_ref[0] = z.reshape(Bt, S, D).astype(out_ref.dtype)


# ----------------------------------------------------------------------------
# Wrapper
# ----------------------------------------------------------------------------

def encoder_layer(poi_input, time_input, distance_input, params, n_head,
                  slf_attn_mask=None):
    """Fused EncoderLayer forward for the three streams.

    Inputs: (B, S, d_model) each.  Returns
      (poi_out, time_out, dist_out, poi_attn, time_attn, dist_attn)
    with outputs (B, S, d_model) and attentions (B, n_head, S, S).
    """
    # TODO(synk): slf_attn_mask support (additive mask on the scores) if needed.
    del slf_attn_mask

    x = jnp.stack([poi_input, time_input, distance_input], axis=0)  # (3, B, S, D)
    _, B, S, D = x.shape
    H = n_head
    dk = D // H
    d_inner = params["w1"].shape[-1]
    eps = 1e-6   # matches nn.LayerNorm(d_in, eps=1e-06)

    Bt = B                     # fold the whole batch into one block per stream
    nb = B // Bt               # batch-tile grid axis (megacore-shardable)

    # bf16 weights for the MXU (halves weight DMA); W_O pre-reshaped head-major.
    bf16 = jnp.bfloat16
    wqkv = params["wqkv"].astype(bf16)
    wo_h = params["wo"].reshape(3, H, dk, D).astype(bf16)
    w1 = params["w1"].astype(bf16)
    w2 = params["w2"].astype(bf16)

    kernel = functools.partial(_encoder_layer_kernel, n_head=H, eps=eps)

    xmap = lambda b, s: (s, b, 0, 0)          # per (stream, batch-tile) activations
    wmap3 = lambda b, s: (s, 0, 0)            # per-stream 3-D weights
    wmap4 = lambda b, s: (s, 0, 0, 0)         # per-stream head-major W_O
    amap = lambda b, s: (s, 0, b, 0, 0)       # attention probabilities

    in_specs = [
        pl.BlockSpec((1, Bt, S, D), xmap),            # x
        pl.BlockSpec((1, D, 3 * D), wmap3),           # wqkv (fused Q/K/V, bf16)
        pl.BlockSpec((1, 1, 3 * D), wmap3),           # bqkv
        pl.BlockSpec((1, H, dk, D), wmap4),           # wo (head-major, bf16)
        pl.BlockSpec((1, 1, D), wmap3),               # bo
        pl.BlockSpec((1, 1, D), wmap3),               # attn LN gamma
        pl.BlockSpec((1, 1, D), wmap3),               # attn LN beta
        pl.BlockSpec((1, D, d_inner), wmap3),         # ffn w1 (bf16)
        pl.BlockSpec((1, 1, d_inner), wmap3),         # ffn b1
        pl.BlockSpec((1, d_inner, D), wmap3),         # ffn w2 (bf16)
        pl.BlockSpec((1, 1, D), wmap3),               # ffn b2
        pl.BlockSpec((1, 1, D), wmap3),               # ffn LN gamma
        pl.BlockSpec((1, 1, D), wmap3),               # ffn LN beta
    ]
    out_specs = (
        pl.BlockSpec((1, Bt, S, D), xmap),
        pl.BlockSpec((1, H, Bt, S, S), amap),
    )
    out_shape = (
        jax.ShapeDtypeStruct((3, B, S, D), x.dtype),
        jax.ShapeDtypeStruct((3, H, B, S, S), jnp.float32),
    )

    # Advisory cost estimate so XLA schedules around the fused custom call.
    flops = int(2 * 3 * B * S * D * 3 * D          # QKV projection
                + 4 * 3 * B * H * S * S * dk       # scores + context
                + 2 * 3 * B * S * D * D            # output projection
                + 4 * 3 * B * S * D * d_inner)     # FFN W1 + W2
    transcendentals = int(3 * B * H * S * S + 6 * 3 * B * S)
    bytes_accessed = int(3 * B * S * D * 4 * 2                      # x in / out
                         + 3 * B * H * S * S * 4                    # attn out
                         + 3 * (3 * D * D + D * D + 2 * D * d_inner) * 2   # bf16 weights
                         + 3 * (3 * D + 6 * D + d_inner) * 4)       # biases / LN
    ce = pl.CostEstimate(flops=flops, transcendentals=transcendentals,
                         bytes_accessed=bytes_accessed)

    out, attn = pl.pallas_call(
        kernel,
        out_shape=out_shape,
        grid=(nb, 3),
        in_specs=in_specs,
        out_specs=out_specs,
        cost_estimate=ce,
        compiler_params=pltpu.CompilerParams(
            dimension_semantics=("parallel", "arbitrary"),
            vmem_limit_bytes=32 * 1024 * 1024),
    )(x, wqkv, params["bqkv"], wo_h, params["bo"],
      params["ln1_g"], params["ln1_b"],
      w1, params["b1"], w2, params["b2"],
      params["ln2_g"], params["ln2_b"])

    poi_attn = jnp.swapaxes(attn[0], 0, 1)    # (H, B, S, S) -> (B, H, S, S)
    time_attn = jnp.swapaxes(attn[1], 0, 1)
    dist_attn = jnp.swapaxes(attn[2], 0, 1)
    return out[0], out[1], out[2], poi_attn, time_attn, dist_attn


# ----------------------------------------------------------------------------
# Deterministic parameter init (per-stream params stacked on axis 0)
# ----------------------------------------------------------------------------

def init_params(key, d_model, d_inner, n_head):
    del n_head
    ks = jax.random.split(key, 8)
    s = 0.02
    D = d_model

    def nrm(k, shape):
        return s * jax.random.normal(k, shape, jnp.float32)

    return {
        # attention (placeholder IrrAttention): per-stream weights stacked
        "wqkv": nrm(ks[0], (3, D, 3 * D)),
        "bqkv": nrm(ks[1], (3, 1, 3 * D)),
        "wo":   nrm(ks[2], (3, D, D)),
        "bo":   nrm(ks[3], (3, 1, D)),
        "ln1_g": jnp.ones((3, 1, D), jnp.float32),
        "ln1_b": jnp.zeros((3, 1, D), jnp.float32),
        # position-wise feed-forward (poi / time / distance) stacked
        "w1":   nrm(ks[4], (3, D, d_inner)),
        "b1":   nrm(ks[5], (3, 1, d_inner)),
        "w2":   nrm(ks[6], (3, d_inner, D)),
        "b2":   nrm(ks[7], (3, 1, D)),
        "ln2_g": jnp.ones((3, 1, D), jnp.float32),
        "ln2_b": jnp.zeros((3, 1, D), jnp.float32),
    }


if __name__ == "__main__":
    # Small shapes consistent with the module's forward.
    B, S = 2, 8
    d_model, d_inner, n_head = 32, 64, 4

    key = jax.random.PRNGKey(0)
    k_in, k_p = jax.random.split(key)
    k_poi, k_time, k_dist = jax.random.split(k_in, 3)

    poi_input = jax.random.normal(k_poi, (B, S, d_model), jnp.float32)
    time_input = jax.random.normal(k_time, (B, S, d_model), jnp.float32)
    distance_input = jax.random.normal(k_dist, (B, S, d_model), jnp.float32)

    params = init_params(k_p, d_model, d_inner, n_head)

    fn = jax.jit(encoder_layer, static_argnames=("n_head",))
    outs = fn(poi_input, time_input, distance_input, params, n_head=n_head)
    outs = jax.block_until_ready(outs)

    assert outs[0].shape == (B, S, d_model)
    assert outs[1].shape == (B, S, d_model)
    assert outs[2].shape == (B, S, d_model)
    assert outs[3].shape == (B, n_head, S, S)
    assert outs[4].shape == (B, n_head, S, S)
    assert outs[5].shape == (B, n_head, S, S)
    assert all(bool(jnp.all(jnp.isfinite(o))) for o in outs)
    print("KERNEL_OK")
</pallas_src>

<mosaic_0001>
module attributes {stable_mosaic.version = 11 : i64} {
  func.func @_encoder_layer_kernel(%arg0: i32, %arg1: i32, %arg2: memref<1x2x8x32xf32, #tpu.memory_space<vmem>>, %arg3: memref<1x32x96xbf16, #tpu.memory_space<vmem>>, %arg4: memref<1x1x96xf32, #tpu.memory_space<vmem>>, %arg5: memref<1x4x8x32xbf16, #tpu.memory_space<vmem>>, %arg6: memref<1x1x32xf32, #tpu.memory_space<vmem>>, %arg7: memref<1x1x32xf32, #tpu.memory_space<vmem>>, %arg8: memref<1x1x32xf32, #tpu.memory_space<vmem>>, %arg9: memref<1x32x64xbf16, #tpu.memory_space<vmem>>, %arg10: memref<1x1x64xf32, #tpu.memory_space<vmem>>, %arg11: memref<1x64x32xbf16, #tpu.memory_space<vmem>>, %arg12: memref<1x1x32xf32, #tpu.memory_space<vmem>>, %arg13: memref<1x1x32xf32, #tpu.memory_space<vmem>>, %arg14: memref<1x1x32xf32, #tpu.memory_space<vmem>>, %arg15: memref<1x2x8x32xf32, #tpu.memory_space<vmem>>, %arg16: memref<1x4x2x8x8xf32, #tpu.memory_space<vmem>>) attributes {dimension_semantics = [#tpu.dimension_semantics<parallel>, #tpu.dimension_semantics<arbitrary>], iteration_bounds = array<i64: 1, 3>, scalar_prefetch = 0 : i64, scratch_operands = 0 : i64, tpu.core_type = #tpu.core_type<tc>, window_params = [{transform_indices = @transform_0, window_bounds = array<i64: 1, 2, 8, 32>}, {transform_indices = @transform_1, window_bounds = array<i64: 1, 32, 96>}, {transform_indices = @transform_2, window_bounds = array<i64: 1, 1, 96>}, {transform_indices = @transform_3, window_bounds = array<i64: 1, 4, 8, 32>}, {transform_indices = @transform_4, window_bounds = array<i64: 1, 1, 32>}, {transform_indices = @transform_5, window_bounds = array<i64: 1, 1, 32>}, {transform_indices = @transform_6, window_bounds = array<i64: 1, 1, 32>}, {transform_indices = @transform_7, window_bounds = array<i64: 1, 32, 64>}, {transform_indices = @transform_8, window_bounds = array<i64: 1, 1, 64>}, {transform_indices = @transform_9, window_bounds = array<i64: 1, 64, 32>}, {transform_indices = @transform_10, window_bounds = array<i64: 1, 1, 32>}, {transform_indices = @transform_11, window_bounds = array<i64: 1, 1, 32>}, {transform_indices = @transform_12, window_bounds = array<i64: 1, 1, 32>}, {transform_indices = @transform_13, window_bounds = array<i64: 1, 2, 8, 32>}, {transform_indices = @transform_14, window_bounds = array<i64: 1, 4, 2, 8, 8>}]} {
    %c0 = arith.constant 0 : index
    %c0_0 = arith.constant 0 : index
    %c0_1 = arith.constant 0 : index
    %c0_2 = arith.constant 0 : index
    %0 = vector.load %arg2[%c0, %c0_0, %c0_1, %c0_2] : memref<1x2x8x32xf32, #tpu.memory_space<vmem>>, vector<1x2x8x32xf32>
    %1 = vector.shape_cast %0 : vector<1x2x8x32xf32> to vector<2x8x32xf32>
    %2 = vector.shape_cast %1 : vector<2x8x32xf32> to vector<16x32xf32>
    %3 = arith.truncf %2 : vector<16x32xf32> to vector<16x32xbf16>
    %c0_3 = arith.constant 0 : index
    %c0_4 = arith.constant 0 : index
    %c0_5 = arith.constant 0 : index
    %4 = vector.load %arg3[%c0_3, %c0_4, %c0_5] : memref<1x32x96xbf16, #tpu.memory_space<vmem>>, vector<1x32x96xbf16>
    %5 = vector.shape_cast %4 : vector<1x32x96xbf16> to vector<32x96xbf16>
    %cst = arith.constant dense<0.000000e+00> : vector<16x96xf32>
    %6 = tpu.matmul %3, %5, %cst {dimension_numbers = #tpu.dot_dimension_numbers<[1], [0], [0], [1], [0, 0, 1, 1], [], []>} : vector<16x32xbf16>, vector<32x96xbf16>, vector<16x96xf32> -> vector<16x96xf32>
    %c0_6 = arith.constant 0 : index
    %c0_7 = arith.constant 0 : index
    %c0_8 = arith.constant 0 : index
    %7 = vector.load %arg4[%c0_6, %c0_7, %c0_8] : memref<1x1x96xf32, #tpu.memory_space<vmem>>, vector<1x1x96xf32>
    %8 = vector.shape_cast %7 : vector<1x1x96xf32> to vector<1x96xf32>
    %9 = vector.broadcast %8 : vector<1x96xf32> to vector<16x96xf32>
    %10 = arith.addf %6, %9 : vector<16x96xf32>
    %cst_9 = arith.constant 0.000000e+00 : f32
    %11 = vector.broadcast %cst_9 : f32 to vector<16x32xf32>
    %12 = vector.extract_strided_slice %10 {offsets = [0, 0], sizes = [16, 8], strides = [1, 1]} : vector<16x96xf32> to vector<16x8xf32>
    %13 = vector.shape_cast %12 : vector<16x8xf32> to vector<2x8x8xf32>
    %14 = arith.truncf %13 : vector<2x8x8xf32> to vector<2x8x8xbf16>
    %15 = vector.extract_strided_slice %10 {offsets = [0, 32], sizes = [16, 8], strides = [1, 1]} : vector<16x96xf32> to vector<16x8xf32>
    %16 = vector.shape_cast %15 : vector<16x8xf32> to vector<2x8x8xf32>
    %17 = arith.truncf %16 : vector<2x8x8xf32> to vector<2x8x8xbf16>
    %18 = vector.extract_strided_slice %10 {offsets = [0, 64], sizes = [16, 8], strides = [1, 1]} : vector<16x96xf32> to vector<16x8xf32>
    %19 = vector.shape_cast %18 : vector<16x8xf32> to vector<2x8x8xf32>
    %20 = arith.truncf %19 : vector<2x8x8xf32> to vector<2x8x8xbf16>
    "tpu.trace_start"() <{level = 10 : i32, message = "bid,bjd->bij"}> : () -> ()
    %cst_10 = arith.constant dense<0.000000e+00> : vector<2x8x8xf32>
    %21 = tpu.matmul %14, %17, %cst_10 {dimension_numbers = #tpu.dot_dimension_numbers<[2], [2], [1], [1], [0, 0, 0, 1, 1, 1], [0], [0]>} : vector<2x8x8xbf16>, vector<2x8x8xbf16>, vector<2x8x8xf32> -> vector<2x8x8xf32>
    "tpu.trace_stop"() : () -> ()
    %cst_11 = arith.constant 0.353553385 : f32
    %22 = vector.broadcast %cst_11 : f32 to vector<2x8x8xf32>
    %23 = arith.mulf %21, %22 : vector<2x8x8xf32>
    %cst_12 = arith.constant dense<0xFF800000> : vector<2x8xf32>
    %24 = vector.multi_reduction <maximumf>, %23, %cst_12 [2] : vector<2x8x8xf32> to vector<2x8xf32>
    %25 = vector.shape_cast %24 : vector<2x8xf32> to vector<2x8x1xf32>
    %26 = vector.broadcast %25 : vector<2x8x1xf32> to vector<2x8x8xf32>
    %27 = arith.subf %23, %26 : vector<2x8x8xf32>
    %28 = math.exp %27 : vector<2x8x8xf32>
    %cst_13 = arith.constant dense<0.000000e+00> : vector<2x8xf32>
    %29 = vector.multi_reduction <add>, %28, %cst_13 [2] : vector<2x8x8xf32> to vector<2x8xf32>
    %30 = vector.shape_cast %29 : vector<2x8xf32> to vector<2x8x1xf32>
    %31 = vector.broadcast %30 : vector<2x8x1xf32> to vector<2x8x8xf32>
    %32 = arith.divf %28, %31 : vector<2x8x8xf32>
    %c0_14 = arith.constant 0 : index
    %c0_15 = arith.constant 0 : index
    %c0_16 = arith.constant 0 : index
    %c0_17 = arith.constant 0 : index
    %c0_18 = arith.constant 0 : index
    %33 = vector.load %arg16[%c0_14, %c0_15, %c0_16, %c0_17, %c0_18] : memref<1x4x2x8x8xf32, #tpu.memory_space<vmem>>, vector<1x1x2x8x8xf32>
    %34 = vector.shape_cast %33 : vector<1x1x2x8x8xf32> to vector<2x8x8xf32>
    %35 = vector.shape_cast %32 : vector<2x8x8xf32> to vector<1x1x2x8x8xf32>
    tpu.vector_store %arg16[%c0_14, %c0_15, %c0_16, %c0_17, %c0_18], %35 {strides = array<i32>} : memref<1x4x2x8x8xf32, #tpu.memory_space<vmem>>, vector<1x1x2x8x8xf32>,
    %36 = arith.truncf %32 : vector<2x8x8xf32> to vector<2x8x8xbf16>
    "tpu.trace_start"() <{level = 10 : i32, message = "bij,bjd->bid"}> : () -> ()
    %cst_19 = arith.constant dense<0.000000e+00> : vector<2x8x8xf32>
    %37 = tpu.matmul %36, %20, %cst_19 {dimension_numbers = #tpu.dot_dimension_numbers<[2], [1], [1], [2], [0, 0, 0, 1, 1, 2], [0], [0]>} : vector<2x8x8xbf16>, vector<2x8x8xbf16>, vector<2x8x8xf32> -> vector<2x8x8xf32>
    "tpu.trace_stop"() : () -> ()
    %38 = vector.shape_cast %37 : vector<2x8x8xf32> to vector<16x8xf32>
    %39 = arith.truncf %38 : vector<16x8xf32> to vector<16x8xbf16>
    %c0_20 = arith.constant 0 : index
    %c0_21 = arith.constant 0 : index
    %c0_22 = arith.constant 0 : index
    %c0_23 = arith.constant 0 : index
    %40 = vector.load %arg5[%c0_20, %c0_21, %c0_22, %c0_23] : memref<1x4x8x32xbf16, #tpu.memory_space<vmem>>, vector<1x1x8x32xbf16>
    %41 = vector.shape_cast %40 : vector<1x1x8x32xbf16> to vector<8x32xbf16>
    %cst_24 = arith.constant dense<0.000000e+00> : vector<16x32xf32>
    %42 = tpu.matmul %39, %41, %cst_24 {dimension_numbers = #tpu.dot_dimension_numbers<[1], [0], [0], [1], [0, 0, 1, 1], [], []>} : vector<16x8xbf16>, vector<8x32xbf16>, vector<16x32xf32> -> vector<16x32xf32>
    %43 = arith.addf %11, %42 : vector<16x32xf32>
    %44 = vector.extract_strided_slice %10 {offsets = [0, 8], sizes = [16, 8], strides = [1, 1]} : vector<16x96xf32> to vector<16x8xf32>
    %45 = vector.shape_cast %44 : vector<16x8xf32> to vector<2x8x8xf32>
    %46 = arith.truncf %45 : vector<2x8x8xf32> to vector<2x8x8xbf16>
    %47 = vector.extract_strided_slice %10 {offsets = [0, 40], sizes = [16, 8], strides = [1, 1]} : vector<16x96xf32> to vector<16x8xf32>
    %48 = vector.shape_cast %47 : vector<16x8xf32> to vector<2x8x8xf32>
    %49 = arith.truncf %48 : vector<2x8x8xf32> to vector<2x8x8xbf16>
    %50 = vector.extract_strided_slice %10 {offsets = [0, 72], sizes = [16, 8], strides = [1, 1]} : vector<16x96xf32> to vector<16x8xf32>
    %51 = vector.shape_cast %50 : vector<16x8xf32> to vector<2x8x8xf32>
    %52 = arith.truncf %51 : vector<2x8x8xf32> to vector<2x8x8xbf16>
    "tpu.trace_start"() <{level = 10 : i32, message = "bid,bjd->bij"}> : () -> ()
    %cst_25 = arith.constant dense<0.000000e+00> : vector<2x8x8xf32>
    %53 = tpu.matmul %46, %49, %cst_25 {dimension_numbers = #tpu.dot_dimension_numbers<[2], [2], [1], [1], [0, 0, 0, 1, 1, 1], [0], [0]>} : vector<2x8x8xbf16>, vector<2x8x8xbf16>, vector<2x8x8xf32> -> vector<2x8x8xf32>
    "tpu.trace_stop"() : () -> ()
    %cst_26 = arith.constant 0.353553385 : f32
    %54 = vector.broadcast %cst_26 : f32 to vector<2x8x8xf32>
    %55 = arith.mulf %53, %54 : vector<2x8x8xf32>
    %cst_27 = arith.constant dense<0xFF800000> : vector<2x8xf32>
    %56 = vector.multi_reduction <maximumf>, %55, %cst_27 [2] : vector<2x8x8xf32> to vector<2x8xf32>
    %57 = vector.shape_cast %56 : vector<2x8xf32> to vector<2x8x1xf32>
    %58 = vector.broadcast %57 : vector<2x8x1xf32> to vector<2x8x8xf32>
    %59 = arith.subf %55, %58 : vector<2x8x8xf32>
    %60 = math.exp %59 : vector<2x8x8xf32>
    %cst_28 = arith.constant dense<0.000000e+00> : vector<2x8xf32>
    %61 = vector.multi_reduction <add>, %60, %cst_28 [2] : vector<2x8x8xf32> to vector<2x8xf32>
    %62 = vector.shape_cast %61 : vector<2x8xf32> to vector<2x8x1xf32>
    %63 = vector.broadcast %62 : vector<2x8x1xf32> to vector<2x8x8xf32>
    %64 = arith.divf %60, %63 : vector<2x8x8xf32>
    %c0_29 = arith.constant 0 : index
    %c1 = arith.constant 1 : index
    %c0_30 = arith.constant 0 : index
    %c0_31 = arith.constant 0 : index
    %c0_32 = arith.constant 0 : index
    %65 = vector.load %arg16[%c0_29, %c1, %c0_30, %c0_31, %c0_32] : memref<1x4x2x8x8xf32, #tpu.memory_space<vmem>>, vector<1x1x2x8x8xf32>
    %66 = vector.shape_cast %65 : vector<1x1x2x8x8xf32> to vector<2x8x8xf32>
    %67 = vector.shape_cast %64 : vector<2x8x8xf32> to vector<1x1x2x8x8xf32>
    tpu.vector_store %arg16[%c0_29, %c1, %c0_30, %c0_31, %c0_32], %67 {strides = array<i32>} : memref<1x4x2x8x8xf32, #tpu.memory_space<vmem>>, vector<1x1x2x8x8xf32>,
    %68 = arith.truncf %64 : vector<2x8x8xf32> to vector<2x8x8xbf16>
    "tpu.trace_start"() <{level = 10 : i32, message = "bij,bjd->bid"}> : () -> ()
    %cst_33 = arith.constant dense<0.000000e+00> : vector<2x8x8xf32>
    %69 = tpu.matmul %68, %52, %cst_33 {dimension_numbers = #tpu.dot_dimension_numbers<[2], [1], [1], [2], [0, 0, 0, 1, 1, 2], [0], [0]>} : vector<2x8x8xbf16>, vector<2x8x8xbf16>, vector<2x8x8xf32> -> vector<2x8x8xf32>
    "tpu.trace_stop"() : () -> ()
    %70 = vector.shape_cast %69 : vector<2x8x8xf32> to vector<16x8xf32>
    %71 = arith.truncf %70 : vector<16x8xf32> to vector<16x8xbf16>
    %c0_34 = arith.constant 0 : index
    %c1_35 = arith.constant 1 : index
    %c0_36 = arith.constant 0 : index
    %c0_37 = arith.constant 0 : index
    %72 = vector.load %arg5[%c0_34, %c1_35, %c0_36, %c0_37] : memref<1x4x8x32xbf16, #tpu.memory_space<vmem>>, vector<1x1x8x32xbf16>
    %73 = vector.shape_cast %72 : vector<1x1x8x32xbf16> to vector<8x32xbf16>
    %cst_38 = arith.constant dense<0.000000e+00> : vector<16x32xf32>
    %74 = tpu.matmul %71, %73, %cst_38 {dimension_numbers = #tpu.dot_dimension_numbers<[1], [0], [0], [1], [0, 0, 1, 1], [], []>} : vector<16x8xbf16>, vector<8x32xbf16>, vector<16x32xf32> -> vector<16x32xf32>
    %75 = arith.addf %43, %74 : vector<16x32xf32>
    %76 = vector.extract_strided_slice %10 {offsets = [0, 16], sizes = [16, 8], strides = [1, 1]} : vector<16x96xf32> to vector<16x8xf32>
    %77 = vector.shape_cast %76 : vector<16x8xf32> to vector<2x8x8xf32>
    %78 = arith.truncf %77 : vector<2x8x8xf32> to vector<2x8x8xbf16>
    %79 = vector.extract_strided_slice %10 {offsets = [0, 48], sizes = [16, 8], strides = [1, 1]} : vector<16x96xf32> to vector<16x8xf32>
    %80 = vector.shape_cast %79 : vector<16x8xf32> to vector<2x8x8xf32>
    %81 = arith.truncf %80 : vector<2x8x8xf32> to vector<2x8x8xbf16>
    %82 = vector.extract_strided_slice %10 {offsets = [0, 80], sizes = [16, 8], strides = [1, 1]} : vector<16x96xf32> to vector<16x8xf32>
    %83 = vector.shape_cast %82 : vector<16x8xf32> to vector<2x8x8xf32>
    %84 = arith.truncf %83 : vector<2x8x8xf32> to vector<2x8x8xbf16>
    "tpu.trace_start"() <{level = 10 : i32, message = "bid,bjd->bij"}> : () -> ()
    %cst_39 = arith.constant dense<0.000000e+00> : vector<2x8x8xf32>
    %85 = tpu.matmul %78, %81, %cst_39 {dimension_numbers = #tpu.dot_dimension_numbers<[2], [2], [1], [1], [0, 0, 0, 1, 1, 1], [0], [0]>} : vector<2x8x8xbf16>, vector<2x8x8xbf16>, vector<2x8x8xf32> -> vector<2x8x8xf32>
    "tpu.trace_stop"() : () -> ()
    %cst_40 = arith.constant 0.353553385 : f32
    %86 = vector.broadcast %cst_40 : f32 to vector<2x8x8xf32>
    %87 = arith.mulf %85, %86 : vector<2x8x8xf32>
    %cst_41 = arith.constant dense<0xFF800000> : vector<2x8xf32>
    %88 = vector.multi_reduction <maximumf>, %87, %cst_41 [2] : vector<2x8x8xf32> to vector<2x8xf32>
    %89 = vector.shape_cast %88 : vector<2x8xf32> to vector<2x8x1xf32>
    %90 = vector.broadcast %89 : vector<2x8x1xf32> to vector<2x8x8xf32>
    %91 = arith.subf %87, %90 : vector<2x8x8xf32>
    %92 = math.exp %91 : vector<2x8x8xf32>
    %cst_42 = arith.constant dense<0.000000e+00> : vector<2x8xf32>
    %93 = vector.multi_reduction <add>, %92, %cst_42 [2] : vector<2x8x8xf32> to vector<2x8xf32>
    %94 = vector.shape_cast %93 : vector<2x8xf32> to vector<2x8x1xf32>
    %95 = vector.broadcast %94 : vector<2x8x1xf32> to vector<2x8x8xf32>
    %96 = arith.divf %92, %95 : vector<2x8x8xf32>
    %c0_43 = arith.constant 0 : index
    %c2 = arith.constant 2 : index
    %c0_44 = arith.constant 0 : index
    %c0_45 = arith.constant 0 : index
    %c0_46 = arith.constant 0 : index
    %97 = vector.load %arg16[%c0_43, %c2, %c0_44, %c0_45, %c0_46] : memref<1x4x2x8x8xf32, #tpu.memory_space<vmem>>, vector<1x1x2x8x8xf32>
    %98 = vector.shape_cast %97 : vector<1x1x2x8x8xf32> to vector<2x8x8xf32>
    %99 = vector.shape_cast %96 : vector<2x8x8xf32> to vector<1x1x2x8x8xf32>
    tpu.vector_store %arg16[%c0_43, %c2, %c0_44, %c0_45, %c0_46], %99 {strides = array<i32>} : memref<1x4x2x8x8xf32, #tpu.memory_space<vmem>>, vector<1x1x2x8x8xf32>,
    %100 = arith.truncf %96 : vector<2x8x8xf32> to vector<2x8x8xbf16>
    "tpu.trace_start"() <{level = 10 : i32, message = "bij,bjd->bid"}> : () -> ()
    %cst_47 = arith.constant dense<0.000000e+00> : vector<2x8x8xf32>
    %101 = tpu.matmul %100, %84, %cst_47 {dimension_numbers = #tpu.dot_dimension_numbers<[2], [1], [1], [2], [0, 0, 0, 1, 1, 2], [0], [0]>} : vector<2x8x8xbf16>, vector<2x8x8xbf16>, vector<2x8x8xf32> -> vector<2x8x8xf32>
    "tpu.trace_stop"() : () -> ()
    %102 = vector.shape_cast %101 : vector<2x8x8xf32> to vector<16x8xf32>
    %103 = arith.truncf %102 : vector<16x8xf32> to vector<16x8xbf16>
    %c0_48 = arith.constant 0 : index
    %c2_49 = arith.constant 2 : index
    %c0_50 = arith.constant 0 : index
    %c0_51 = arith.constant 0 : index
    %104 = vector.load %arg5[%c0_48, %c2_49, %c0_50, %c0_51] : memref<1x4x8x32xbf16, #tpu.memory_space<vmem>>, vector<1x1x8x32xbf16>
    %105 = vector.shape_cast %104 : vector<1x1x8x32xbf16> to vector<8x32xbf16>
    %cst_52 = arith.constant dense<0.000000e+00> : vector<16x32xf32>
    %106 = tpu.matmul %103, %105, %cst_52 {dimension_numbers = #tpu.dot_dimension_numbers<[1], [0], [0], [1], [0, 0, 1, 1], [], []>} : vector<16x8xbf16>, vector<8x32xbf16>, vector<16x32xf32> -> vector<16x32xf32>
    %107 = arith.addf %75, %106 : vector<16x32xf32>
    %108 = vector.extract_strided_slice %10 {offsets = [0, 24], sizes = [16, 8], strides = [1, 1]} : vector<16x96xf32> to vector<16x8xf32>
    %109 = vector.shape_cast %108 : vector<16x8xf32> to vector<2x8x8xf32>
    %110 = arith.truncf %109 : vector<2x8x8xf32> to vector<2x8x8xbf16>
    %111 = vector.extract_strided_slice %10 {offsets = [0, 56], sizes = [16, 8], strides = [1, 1]} : vector<16x96xf32> to vector<16x8xf32>
    %112 = vector.shape_cast %111 : vector<16x8xf32> to vector<2x8x8xf32>
    %113 = arith.truncf %112 : vector<2x8x8xf32> to vector<2x8x8xbf16>
    %114 = vector.extract_strided_slice %10 {offsets = [0, 88], sizes = [16, 8], strides = [1, 1]} : vector<16x96xf32> to vector<16x8xf32>
    %115 = vector.shape_cast %114 : vector<16x8xf32> to vector<2x8x8xf32>
    %116 = arith.truncf %115 : vector<2x8x8xf32> to vector<2x8x8xbf16>
    "tpu.trace_start"() <{level = 10 : i32, message = "bid,bjd->bij"}> : () -> ()
    %cst_53 = arith.constant dense<0.000000e+00> : vector<2x8x8xf32>
    %117 = tpu.matmul %110, %113, %cst_53 {dimension_numbers = #tpu.dot_dimension_numbers<[2], [2], [1], [1], [0, 0, 0, 1, 1, 1], [0], [0]>} : vector<2x8x8xbf16>, vector<2x8x8xbf16>, vector<2x8x8xf32> -> vector<2x8x8xf32>
    "tpu.trace_stop"() : () -> ()
    %cst_54 = arith.constant 0.353553385 : f32
    %118 = vector.broadcast %cst_54 : f32 to vector<2x8x8xf32>
    %119 = arith.mulf %117, %118 : vector<2x8x8xf32>
    %cst_55 = arith.constant dense<0xFF800000> : vector<2x8xf32>
    %120 = vector.multi_reduction <maximumf>, %119, %cst_55 [2] : vector<2x8x8xf32> to vector<2x8xf32>
    %121 = vector.shape_cast %120 : vector<2x8xf32> to vector<2x8x1xf32>
    %122 = vector.broadcast %121 : vector<2x8x1xf32> to vector<2x8x8xf32>
    %123 = arith.subf %119, %122 : vector<2x8x8xf32>
    %124 = math.exp %123 : vector<2x8x8xf32>
    %cst_56 = arith.constant dense<0.000000e+00> : vector<2x8xf32>
    %125 = vector.multi_reduction <add>, %124, %cst_56 [2] : vector<2x8x8xf32> to vector<2x8xf32>
    %126 = vector.shape_cast %125 : vector<2x8xf32> to vector<2x8x1xf32>
    %127 = vector.broadcast %126 : vector<2x8x1xf32> to vector<2x8x8xf32>
    %128 = arith.divf %124, %127 : vector<2x8x8xf32>
    %c0_57 = arith.constant 0 : index
    %c3 = arith.constant 3 : index
    %c0_58 = arith.constant 0 : index
    %c0_59 = arith.constant 0 : index
    %c0_60 = arith.constant 0 : index
    %129 = vector.load %arg16[%c0_57, %c3, %c0_58, %c0_59, %c0_60] : memref<1x4x2x8x8xf32, #tpu.memory_space<vmem>>, vector<1x1x2x8x8xf32>
    %130 = vector.shape_cast %129 : vector<1x1x2x8x8xf32> to vector<2x8x8xf32>
    %131 = vector.shape_cast %128 : vector<2x8x8xf32> to vector<1x1x2x8x8xf32>
    tpu.vector_store %arg16[%c0_57, %c3, %c0_58, %c0_59, %c0_60], %131 {strides = array<i32>} : memref<1x4x2x8x8xf32, #tpu.memory_space<vmem>>, vector<1x1x2x8x8xf32>,
    %132 = arith.truncf %128 : vector<2x8x8xf32> to vector<2x8x8xbf16>
    "tpu.trace_start"() <{level = 10 : i32, message = "bij,bjd->bid"}> : () -> ()
    %cst_61 = arith.constant dense<0.000000e+00> : vector<2x8x8xf32>
    %133 = tpu.matmul %132, %116, %cst_61 {dimension_numbers = #tpu.dot_dimension_numbers<[2], [1], [1], [2], [0, 0, 0, 1, 1, 2], [0], [0]>} : vector<2x8x8xbf16>, vector<2x8x8xbf16>, vector<2x8x8xf32> -> vector<2x8x8xf32>
    "tpu.trace_stop"() : () -> ()
    %134 = vector.shape_cast %133 : vector<2x8x8xf32> to vector<16x8xf32>
    %135 = arith.truncf %134 : vector<16x8xf32> to vector<16x8xbf16>
    %c0_62 = arith.constant 0 : index
    %c3_63 = arith.constant 3 : index
    %c0_64 = arith.constant 0 : index
    %c0_65 = arith.constant 0 : index
    %136 = vector.load %arg5[%c0_62, %c3_63, %c0_64, %c0_65] : memref<1x4x8x32xbf16, #tpu.memory_space<vmem>>, vector<1x1x8x32xbf16>
    %137 = vector.shape_cast %136 : vector<1x1x8x32xbf16> to vector<8x32xbf16>
    %cst_66 = arith.constant dense<0.000000e+00> : vector<16x32xf32>
    %138 = tpu.matmul %135, %137, %cst_66 {dimension_numbers = #tpu.dot_dimension_numbers<[1], [0], [0], [1], [0, 0, 1, 1], [], []>} : vector<16x8xbf16>, vector<8x32xbf16>, vector<16x32xf32> -> vector<16x32xf32>
    %139 = arith.addf %107, %138 : vector<16x32xf32>
    %c0_67 = arith.constant 0 : index
    %c0_68 = arith.constant 0 : index
    %c0_69 = arith.constant 0 : index
    %140 = vector.load %arg6[%c0_67, %c0_68, %c0_69] : memref<1x1x32xf32, #tpu.memory_space<vmem>>, vector<1x1x32xf32>
    %141 = vector.shape_cast %140 : vector<1x1x32xf32> to vector<1x32xf32>
    %142 = vector.broadcast %141 : vector<1x32xf32> to vector<16x32xf32>
    %143 = arith.addf %139, %142 : vector<16x32xf32>
    %144 = arith.addf %143, %2 : vector<16x32xf32>
    %c0_70 = arith.constant 0 : index
    %c0_71 = arith.constant 0 : index
    %c0_72 = arith.constant 0 : index
    %145 = vector.load %arg7[%c0_70, %c0_71, %c0_72] : memref<1x1x32xf32, #tpu.memory_space<vmem>>, vector<1x1x32xf32>
    %146 = vector.shape_cast %145 : vector<1x1x32xf32> to vector<1x32xf32>
    %c0_73 = arith.constant 0 : index
    %c0_74 = arith.constant 0 : index
    %c0_75 = arith.constant 0 : index
    %147 = vector.load %arg8[%c0_73, %c0_74, %c0_75] : memref<1x1x32xf32, #tpu.memory_space<vmem>>, vector<1x1x32xf32>
    %148 = vector.shape_cast %147 : vector<1x1x32xf32> to vector<1x32xf32>
    %cst_76 = arith.constant dense<0.000000e+00> : vector<16xf32>
    %149 = vector.multi_reduction <add>, %144, %cst_76 [1] : vector<16x32xf32> to vector<16xf32>
    %150 = vector.shape_cast %149 : vector<16xf32> to vector<16x1xf32>
    %cst_77 = arith.constant 3.200000e+01 : f32
    %151 = vector.broadcast %cst_77 : f32 to vector<16x1xf32>
    %152 = arith.divf %150, %151 : vector<16x1xf32>
    %153 = arith.mulf %144, %144 : vector<16x32xf32>
    %cst_78 = arith.constant dense<0.000000e+00> : vector<16xf32>
    %154 = vector.multi_reduction <add>, %153, %cst_78 [1] : vector<16x32xf32> to vector<16xf32>
    %155 = vector.shape_cast %154 : vector<16xf32> to vector<16x1xf32>
    %cst_79 = arith.constant 3.200000e+01 : f32
    %156 = vector.broadcast %cst_79 : f32 to vector<16x1xf32>
    %157 = arith.divf %155, %156 : vector<16x1xf32>
    %158 = arith.mulf %152, %152 : vector<16x1xf32>
    %159 = arith.subf %157, %158 : vector<16x1xf32>
    %cst_80 = arith.constant 0.000000e+00 : f32
    %160 = vector.broadcast %cst_80 : f32 to vector<16x1xf32>
    %161 = arith.maximumf %159, %160 : vector<16x1xf32>
    %162 = vector.broadcast %152 : vector<16x1xf32> to vector<16x32xf32>
    %163 = arith.subf %144, %162 : vector<16x32xf32>
    %cst_81 = arith.constant 9.99999997E-7 : f32
    %164 = vector.broadcast %cst_81 : f32 to vector<16x1xf32>
    %165 = arith.addf %161, %164 : vector<16x1xf32>
    %166 = math.rsqrt %165 : vector<16x1xf32>
    %167 = vector.broadcast %166 : vector<16x1xf32> to vector<16x32xf32>
    %168 = arith.mulf %163, %167 : vector<16x32xf32>
    %169 = vector.broadcast %146 : vector<1x32xf32> to vector<16x32xf32>
    %170 = arith.mulf %168, %169 : vector<16x32xf32>
    %171 = vector.broadcast %148 : vector<1x32xf32> to vector<16x32xf32>
    %172 = arith.addf %170, %171 : vector<16x32xf32>
    %173 = arith.truncf %172 : vector<16x32xf32> to vector<16x32xbf16>
    %c0_82 = arith.constant 0 : index
    %c0_83 = arith.constant 0 : index
    %c0_84 = arith.constant 0 : index
    %174 = vector.load %arg9[%c0_82, %c0_83, %c0_84] : memref<1x32x64xbf16, #tpu.memory_space<vmem>>, vector<1x32x64xbf16>
    %175 = vector.shape_cast %174 : vector<1x32x64xbf16> to vector<32x64xbf16>
    %cst_85 = arith.constant dense<0.000000e+00> : vector<16x64xf32>
    %176 = tpu.matmul %173, %175, %cst_85 {dimension_numbers = #tpu.dot_dimension_numbers<[1], [0], [0], [1], [0, 0, 1, 1], [], []>} : vector<16x32xbf16>, vector<32x64xbf16>, vector<16x64xf32> -> vector<16x64xf32>
    %c0_86 = arith.constant 0 : index
    %c0_87 = arith.constant 0 : index
    %c0_88 = arith.constant 0 : index
    %177 = vector.load %arg10[%c0_86, %c0_87, %c0_88] : memref<1x1x64xf32, #tpu.memory_space<vmem>>, vector<1x1x64xf32>
    %178 = vector.shape_cast %177 : vector<1x1x64xf32> to vector<1x64xf32>
    %179 = vector.broadcast %178 : vector<1x64xf32> to vector<16x64xf32>
    %180 = arith.addf %176, %179 : vector<16x64xf32>
    %cst_89 = arith.constant 0.000000e+00 : f32
    %181 = vector.broadcast %cst_89 : f32 to vector<16x64xf32>
    %182 = arith.maximumf %180, %181 : vector<16x64xf32>
    %183 = arith.truncf %182 : vector<16x64xf32> to vector<16x64xbf16>
    %c0_90 = arith.constant 0 : index
    %c0_91 = arith.constant 0 : index
    %c0_92 = arith.constant 0 : index
    %184 = vector.load %arg11[%c0_90, %c0_91, %c0_92] : memref<1x64x32xbf16, #tpu.memory_space<vmem>>, vector<1x64x32xbf16>
    %185 = vector.shape_cast %184 : vector<1x64x32xbf16> to vector<64x32xbf16>
    %cst_93 = arith.constant dense<0.000000e+00> : vector<16x32xf32>
    %186 = tpu.matmul %183, %185, %cst_93 {dimension_numbers = #tpu.dot_dimension_numbers<[1], [0], [0], [1], [0, 0, 1, 1], [], []>} : vector<16x64xbf16>, vector<64x32xbf16>, vector<16x32xf32> -> vector<16x32xf32>
    %c0_94 = arith.constant 0 : index
    %c0_95 = arith.constant 0 : index
    %c0_96 = arith.constant 0 : index
    %187 = vector.load %arg12[%c0_94, %c0_95, %c0_96] : memref<1x1x32xf32, #tpu.memory_space<vmem>>, vector<1x1x32xf32>
    %188 = vector.shape_cast %187 : vector<1x1x32xf32> to vector<1x32xf32>
    %189 = vector.broadcast %188 : vector<1x32xf32> to vector<16x32xf32>
    %190 = arith.addf %186, %189 : vector<16x32xf32>
    %191 = arith.addf %190, %172 : vector<16x32xf32>
    %c0_97 = arith.constant 0 : index
    %c0_98 = arith.constant 0 : index
    %c0_99 = arith.constant 0 : index
    %192 = vector.load %arg13[%c0_97, %c0_98, %c0_99] : memref<1x1x32xf32, #tpu.memory_space<vmem>>, vector<1x1x32xf32>
    %193 = vector.shape_cast %192 : vector<1x1x32xf32> to vector<1x32xf32>
    %c0_100 = arith.constant 0 : index
    %c0_101 = arith.constant 0 : index
    %c0_102 = arith.constant 0 : index
    %194 = vector.load %arg14[%c0_100, %c0_101, %c0_102] : memref<1x1x32xf32, #tpu.memory_space<vmem>>, vector<1x1x32xf32>
    %195 = vector.shape_cast %194 : vector<1x1x32xf32> to vector<1x32xf32>
    %cst_103 = arith.constant dense<0.000000e+00> : vector<16xf32>
    %196 = vector.multi_reduction <add>, %191, %cst_103 [1] : vector<16x32xf32> to vector<16xf32>
    %197 = vector.shape_cast %196 : vector<16xf32> to vector<16x1xf32>
    %cst_104 = arith.constant 3.200000e+01 : f32
    %198 = vector.broadcast %cst_104 : f32 to vector<16x1xf32>
    %199 = arith.divf %197, %198 : vector<16x1xf32>
    %200 = arith.mulf %191, %191 : vector<16x32xf32>
    %cst_105 = arith.constant dense<0.000000e+00> : vector<16xf32>
    %201 = vector.multi_reduction <add>, %200, %cst_105 [1] : vector<16x32xf32> to vector<16xf32>
    %202 = vector.shape_cast %201 : vector<16xf32> to vector<16x1xf32>
    %cst_106 = arith.constant 3.200000e+01 : f32
    %203 = vector.broadcast %cst_106 : f32 to vector<16x1xf32>
    %204 = arith.divf %202, %203 : vector<16x1xf32>
    %205 = arith.mulf %199, %199 : vector<16x1xf32>
    %206 = arith.subf %204, %205 : vector<16x1xf32>
    %cst_107 = arith.constant 0.000000e+00 : f32
    %207 = vector.broadcast %cst_107 : f32 to vector<16x1xf32>
    %208 = arith.maximumf %206, %207 : vector<16x1xf32>
    %209 = vector.broadcast %199 : vector<16x1xf32> to vector<16x32xf32>
    %210 = arith.subf %191, %209 : vector<16x32xf32>
    %cst_108 = arith.constant 9.99999997E-7 : f32
    %211 = vector.broadcast %cst_108 : f32 to vector<16x1xf32>
    %212 = arith.addf %208, %211 : vector<16x1xf32>
    %213 = math.rsqrt %212 : vector<16x1xf32>
    %214 = vector.broadcast %213 : vector<16x1xf32> to vector<16x32xf32>
    %215 = arith.mulf %210, %214 : vector<16x32xf32>
    %216 = vector.broadcast %193 : vector<1x32xf32> to vector<16x32xf32>
    %217 = arith.mulf %215, %216 : vector<16x32xf32>
    %218 = vector.broadcast %195 : vector<1x32xf32> to vector<16x32xf32>
    %219 = arith.addf %217, %218 : vector<16x32xf32>
    %220 = vector.shape_cast %219 : vector<16x32xf32> to vector<2x8x32xf32>
    %c0_109 = arith.constant 0 : index
    %c0_110 = arith.constant 0 : index
    %c0_111 = arith.constant 0 : index
    %c0_112 = arith.constant 0 : index
    %221 = vector.load %arg15[%c0_109, %c0_110, %c0_111, %c0_112] : memref<1x2x8x32xf32, #tpu.memory_space<vmem>>, vector<1x2x8x32xf32>
    %222 = vector.shape_cast %221 : vector<1x2x8x32xf32> to vector<2x8x32xf32>
    %223 = vector.shape_cast %220 : vector<2x8x32xf32> to vector<1x2x8x32xf32>
    tpu.vector_store %arg15[%c0_109, %c0_110, %c0_111, %c0_112], %223 {strides = array<i32>} : memref<1x2x8x32xf32, #tpu.memory_space<vmem>>, vector<1x2x8x32xf32>,
    return
  }
  func.func @transform_0(%arg0: i32, %arg1: i32) -> (i32, i32, i32, i32) {
    %c0_i32 = arith.constant 0 : i32
    %c0_i32_0 = arith.constant 0 : i32
    %c0_i32_1 = arith.constant 0 : i32
    return %arg1, %arg0, %c0_i32, %c0_i32_0 : i32, i32, i32, i32
  }
  func.func @transform_1(%arg0: i32, %arg1: i32) -> (i32, i32, i32) {
    %c0_i32 = arith.constant 0 : i32
    %c0_i32_0 = arith.constant 0 : i32
    %c0_i32_1 = arith.constant 0 : i32
    return %arg1, %c0_i32, %c0_i32_0 : i32, i32, i32
  }
  func.func @transform_2(%arg0: i32, %arg1: i32) -> (i32, i32, i32) {
    %c0_i32 = arith.constant 0 : i32
    %c0_i32_0 = arith.constant 0 : i32
    %c0_i32_1 = arith.constant 0 : i32
    return %arg1, %c0_i32, %c0_i32_0 : i32, i32, i32
  }
  func.func @transform_3(%arg0: i32, %arg1: i32) -> (i32, i32, i32, i32) {
    %c0_i32 = arith.constant 0 : i32
    %c0_i32_0 = arith.constant 0 : i32
    %c0_i32_1 = arith.constant 0 : i32
    %c0_i32_2 = arith.constant 0 : i32
    return %arg1, %c0_i32, %c0_i32_0, %c0_i32_1 : i32, i32, i32, i32
  }
  func.func @transform_4(%arg0: i32, %arg1: i32) -> (i32, i32, i32) {
    %c0_i32 = arith.constant 0 : i32
    %c0_i32_0 = arith.constant 0 : i32
    %c0_i32_1 = arith.constant 0 : i32
    return %arg1, %c0_i32, %c0_i32_0 : i32, i32, i32
  }
  func.func @transform_5(%arg0: i32, %arg1: i32) -> (i32, i32, i32) {
    %c0_i32 = arith.constant 0 : i32
    %c0_i32_0 = arith.constant 0 : i32
    %c0_i32_1 = arith.constant 0 : i32
    return %arg1, %c0_i32, %c0_i32_0 : i32, i32, i32
  }
  func.func @transform_6(%arg0: i32, %arg1: i32) -> (i32, i32, i32) {
    %c0_i32 = arith.constant 0 : i32
    %c0_i32_0 = arith.constant 0 : i32
    %c0_i32_1 = arith.constant 0 : i32
    return %arg1, %c0_i32, %c0_i32_0 : i32, i32, i32
  }
  func.func @transform_7(%arg0: i32, %arg1: i32) -> (i32, i32, i32) {
    %c0_i32 = arith.constant 0 : i32
    %c0_i32_0 = arith.constant 0 : i32
    %c0_i32_1 = arith.constant 0 : i32
    return %arg1, %c0_i32, %c0_i32_0 : i32, i32, i32
  }
  func.func @transform_8(%arg0: i32, %arg1: i32) -> (i32, i32, i32) {
    %c0_i32 = arith.constant 0 : i32
    %c0_i32_0 = arith.constant 0 : i32
    %c0_i32_1 = arith.constant 0 : i32
    return %arg1, %c0_i32, %c0_i32_0 : i32, i32, i32
  }
  func.func @transform_9(%arg0: i32, %arg1: i32) -> (i32, i32, i32) {
    %c0_i32 = arith.constant 0 : i32
    %c0_i32_0 = arith.constant 0 : i32
    %c0_i32_1 = arith.constant 0 : i32
    return %arg1, %c0_i32, %c0_i32_0 : i32, i32, i32
  }
  func.func @transform_10(%arg0: i32, %arg1: i32) -> (i32, i32, i32) {
    %c0_i32 = arith.constant 0 : i32
    %c0_i32_0 = arith.constant 0 : i32
    %c0_i32_1 = arith.constant 0 : i32
    return %arg1, %c0_i32, %c0_i32_0 : i32, i32, i32
  }
  func.func @transform_11(%arg0: i32, %arg1: i32) -> (i32, i32, i32) {
    %c0_i32 = arith.constant 0 : i32
    %c0_i32_0 = arith.constant 0 : i32
    %c0_i32_1 = arith.constant 0 : i32
    return %arg1, %c0_i32, %c0_i32_0 : i32, i32, i32
  }
  func.func @transform_12(%arg0: i32, %arg1: i32) -> (i32, i32, i32) {
    %c0_i32 = arith.constant 0 : i32
    %c0_i32_0 = arith.constant 0 : i32
    %c0_i32_1 = arith.constant 0 : i32
    return %arg1, %c0_i32, %c0_i32_0 : i32, i32, i32
  }
  func.func @transform_13(%arg0: i32, %arg1: i32) -> (i32, i32, i32, i32) {
    %c0_i32 = arith.constant 0 : i32
    %c0_i32_0 = arith.constant 0 : i32
    %c0_i32_1 = arith.constant 0 : i32
    return %arg1, %arg0, %c0_i32, %c0_i32_0 : i32, i32, i32, i32
  }
  func.func @transform_14(%arg0: i32, %arg1: i32) -> (i32, i32, i32, i32, i32) {
    %c0_i32 = arith.constant 0 : i32
    %c0_i32_0 = arith.constant 0 : i32
    %c0_i32_1 = arith.constant 0 : i32
    %c0_i32_2 = arith.constant 0 : i32
    return %arg1, %c0_i32, %arg0, %c0_i32_0, %c0_i32_1 : i32, i32, i32, i32, i32
  }
}

</mosaic_0001>

<bundles_post_ra>
// kernel: encoder_layer.1
= control target key start
LH: loop header
LB: loop body
LE: loop exit
PB: predicated region body
PF: predicated region fallthrough
CT: control target
= control target key end

     0   :  { %s2229_s29 = smov 0   ;;  %s2231_s30 = smov 0   ;;  %s2527_s0 = inlined_call_operand.vmem [shape: f32[3,2,8,32], index: 0, kind: input, shape index: {}]   ;;  %s2528_s1 = inlined_call_operand.vmem [shape: bf16[3,32,96], index: 1, kind: input, shape index: {}]   ;;  %s2529_s2 = inlined_call_operand.vmem [shape: f32[3,1,96], index: 2, kind: input, shape index: {}]   ;;  %s2530_s3 = inlined_call_operand.vmem [shape: bf16[3,4,8,32], index: 3, kind: input, shape index: {}]   ;;  %s2531_s4 = inlined_call_operand.vmem [shape: f32[3,1,32], index: 4, kind: input, shape index: {}]   ;;  %s2532_s5 = inlined_call_operand.vmem [shape: f32[3,1,32], index: 5, kind: input, shape index: {}]   ;;  %s2533_s6 = inlined_call_operand.vmem [shape: f32[3,1,32], index: 6, kind: input, shape index: {}]   ;;  %s2534_s7 = inlined_call_operand.vmem [shape: bf16[3,32,64], index: 7, kind: input, shape index: {}]   ;;  %s2535_s8 = inlined_call_operand.vmem [shape: f32[3,1,64], index: 8, kind: input, shape index: {}]   ;;  %s2536_s9 = inlined_call_operand.vmem [shape: bf16[3,64,32], index: 9, kind: input, shape index: {}]   ;;  %s2537_s10 = inlined_call_operand.vmem [shape: f32[3,1,32], index: 10, kind: input, shape index: {}]   ;;  %s2538_s11 = inlined_call_operand.vmem [shape: f32[3,1,32], index: 11, kind: input, shape index: {}]   ;;  %s2539_s12 = inlined_call_operand.vmem [shape: f32[3,1,32], index: 12, kind: input, shape index: {}]   ;;  %s2540_s13 = inlined_call_operand.vmem [shape: f32[3,2,8,32], index: 13, kind: output, shape index: {0}]   ;;  %s2541_s14 = inlined_call_operand.vmem [shape: f32[3,4,2,8,8], index: 14, kind: output, shape index: {1}]  }
   0x1   :  { %s2233_s15 = smov 0  }
   0x2 LB: > { %s34_s16 = sadd.s32 1, %s2136_s30  ;;  %p1936_p0 = scmp.ge.s32.totalorder %s2140_s15, 1  ;;  %s2140_s15 = sphi %s2233_s15, %s25_s15   ;;  %s2136_s30 = sphi %s2231_s30, %s2543_s30   ;;  %s2132_s29 = sphi %s2229_s29, %s2542_s29  }
   0x3   : > { %p35_p1 = scmp.ge.s32.totalorder %s34_s16, 3  ;;  %p542_p2 = scmp.lt.s32.totalorder %s2140_s15, 4 }
   0x5   : > { %s2545_s16 = smov (%p35_p1, %s34_s16), 0  ;;  %p543_p3 = pnand %p1936_p0, %p542_p2 }
   0x6   : > { %p650_p4 = scmp.lt.s32.totalorder (!%p543_p3), %s2132_s29, 2  ;;  %s2142_s27 = smov (!%p543_p3), 96  }
   0x7   : > { %546 = sbr.rel (%p543_p3) target bundleno = 2378 (0x94a), region = 72  ;;  %s2143_s28 = smov (!%p543_p3), 88  }
   0x8   : > { %s2144_s18 = smov (!%p543_p3), 120   ;;  %s2145_s19 = smov (!%p543_p3), 56  }
   0x9   : > { %s2147_s21 = smov (!%p543_p3), 112   ;;  %s2148_s22 = smov (!%p543_p3), 64  }
   0xa   : > { %s2150_s24 = smov (!%p543_p3), 72   ;;  %s2151_s25 = smov (!%p543_p3), 104  }
   0xc   : > { %s2547_s29 = smov (!%p650_p4, %s2132_s29), 2  ;;  %vm747_vm0 = vcmask 261120   ;;  %vm772_vm1 = vcmask 64512   ;;  %vm875_vm2 = vcmask 1043456  }
   0xd   : > { %s2250_s17 = sshll.u32 %s2547_s29, 4  ;;  %s666_s20 = scalar_lea.vmem %s2529_s2, %s2547_s29 }
   0xe   : > { %s663_s23 = scalar_lea.vmem %s2528_s1, %s2250_s17  ;;  %s657_s26 = scalar_lea.vmem %s2527_s0, %s2250_s17  ;;  %v2068_v5 = vld [vmem:[%s666_s20] ss:$0 sm:$0xff] }
   0xf   : > { %v2025_v0 = vld [vmem:[%s663_s23 + $0x8] sm:$0xff]  ;;  %v2024_v1 = vld [vmem:[%s663_s23] sm:$0xff]  ;;  %s2146_s20 = smov 80   ;;  %s2149_s23 = smov 48  }
  0x10   : > { %757 = vmatpush.bf16.msra.mxu0 %v2025_v0  ;;  %v2264_v2 = vld [vmem:[%s657_s26] sm:$0xff]  ;;  %v2266_v3 = vld [vmem:[%s657_s26 + $0x8] sm:$0xff]  ;;  %s685_s26 = scalar_lea.vmem %s2534_s7, %s2250_s17 }
  0x11   : > { %v726_v4 = vpack.c.bf16 %v2266_v3, %v2264_v2 }
  0x14   : > { %758 = vmatpush.bf16.msra.mxu0 %v2024_v1 }
  0x17   : > { %1959 = vmatmul.msk.bf16.vlgmr.msra.gmra.mxu0 %vm747_vm0, %v726_v4 }
  0x94   : > { %v760_v6 = vpop.f32.mrf.mxu0 }
  0x95   : > { %v761_v7 = vadd.f32 %v2068_v5, %v760_v6 }
  0x97   : > { %v765_v8 = vpack.c.bf16 %v761_v7, %v761_v7 }
  0x99   : > { %v768_v9 = vunpack.c.l.b16 %v765_v8 }
  0x9b   : > { %v2271_v10 = vpack.c.b16 %v768_v9, %v768_v9 }
  0x9c   : > { %v762_v11 = vpop.f32.mrf.mxu0 }
  0x9d   : > { %v763_v12 = vadd.f32 %v2068_v5, %v762_v11  ;;  %770 = vrot.lane.b32.xlu1 %v2271_v10, %s2142_s27  ;;  %917 = vrot.lane.b32.xlu0 %v2271_v10, %s2143_s28 }
  0x9f   : > { %v766_v13 = vpack.c.bf16 %v763_v12, %v763_v12 }
  0xa1   : > { %v793_v14 = vunpack.c.l.b16 %v766_v13 }
  0xa3   : > { %v2275_v15 = vpack.c.b16 %v793_v14, %v793_v14 }
  0xa5   : > { %940 = vrot.lane.b32.xlu2 %v2275_v15, %s2143_s28  ;;  %795 = vrot.lane.b32.xlu1 %v2275_v15, %s2142_s27  ;;  %s2333_s28 = scalar_lea.vmem %s2530_s3, %s2250_s17  ;;  %s702_s27 = scalar_lea.vmem %s2539_s12, %s2547_s29 }
  0xa6   : > { %915 = vrot.lane.b32.xlu0 %v2271_v10, %s2144_s18  ;;  %v1970_v6 = vld [vmem:[%s2333_s28 + $0x4] sm:$0xf] }
  0xad   : > { %938 = vrot.lane.b32.xlu2 %v2275_v15, %s2144_s18  ;;  %s2023_s18 = sshll.u32 %s2547_s29, 6 }
  0xb5   : > { %1016 = vrot.lane.b32.xlu2 %v2271_v10, %s2145_s19 }
  0xff   : > { %v941_v16 = vpop.permute.xlu2 %940 }
 0x100   : > { %v946_v22 = vsel %vm772_vm1, %v941_v16, 0 }
 0x107   : > { %v939_v17 = vpop.permute.xlu2 %938 }
 0x10f   : > { %v771_v18 = vpop.permute.xlu1 %770  ;;  %v918_v19 = vpop.permute.xlu0 %917 }
 0x110   : > { %v777_v20 = vsel %vm772_vm1, %v771_v18, 0  ;;  %v923_v21 = vsel %vm772_vm1, %v918_v19, 0  ;;  %v1017_v23 = vpop.permute.xlu2 %1016 }
 0x111   : > { %786 = vmatpush.bf16.xpose.msra.mxu1 %v777_v20  ;;  %932 = vmatpush.bf16.xpose.msrb.mxu0 %v923_v21  ;;  %v1022_v27 = vsel %vm875_vm2, %v1017_v23, 0 }
 0x117   : > { %v796_v24 = vpop.permute.xlu1 %795 }
 0x118   : > { %v916_v25 = vpop.permute.xlu0 %915  ;;  %1960 = vmatmul.msk.bf16.vlgmr.msra.gmra.mxu1 %vm772_vm1, %v765_v8  ;;  %v801_v26 = vsel %vm772_vm1, %v796_v24, 0  ;;  %v1065_v8 = vsel %vm875_vm2, %v1970_v6, 0 }
 0x119   : > { %955 = vmatpush.bf16.xpose.msrb.mxu1 %v946_v22  ;;  %1964 = vmatmul.msk.bf16.vlgmr.msrb.gmra.mxu0 %vm772_vm1, %v916_v25 }
 0x11a   : > { %810 = vmatpush.bf16.xpose.msra.mxu2 %v801_v26  ;;  %1074 = vmatpush.bf16.msra.mxu0 %v1065_v8 }
 0x121   : > { %1961 = vmatmul.msk.bf16.vlgmr.msra.gmra.mxu2 %vm772_vm1, %v766_v13 }
 0x122   : > { %1031 = vmatpush.bf16.msrb.mxu2 %v1022_v27 }
 0x128   : > { %1965 = vmatmul.msk.bf16.vlgmr.msrb.gmra.mxu1 %vm772_vm1, %v939_v17 }
 0x195   : > { %v788_v28 = vpop.f32.mrf.mxu1 }
 0x196   : > { %v816_v29 = vmul.f32 0.35355338, %v788_v28  ;;  %v934_v30 = vpop.f32.mrf.mxu0 }
 0x197   : > { %v961_v31 = vmul.f32 0.35355338, %v934_v30 }
 0x198   : > { %v818_v32 = vsel %vm772_vm1, %v816_v29, -inf }
 0x199   : > { %819 = vmax.xlane.f32.xlu2 %v818_v32  ;;  %v963_v33 = vsel %vm772_vm1, %v961_v31, -inf }
 0x19a   : > { %964 = vmax.xlane.f32.xlu0 %v963_v33 }
 0x19d   : > { %v790_v34 = vpop.f32.mrf.mxu1 }
 0x19e   : > { %v936_v35 = vpop.f32.mrf.mxu0 }
 0x1a4   : > { %v812_v36 = vpop.f32.mrf.mxu2 }
 0x1a5   : > { %v817_v37 = vmul.f32 0.35355338, %v812_v36  ;;  %v957_v38 = vpop.f32.mrf.mxu1 }
 0x1a6   : > { %v962_v40 = vmul.f32 0.35355338, %v957_v38 }
 0x1a7   : > { %v821_v39 = vsel %vm772_vm1, %v817_v37, -inf }
 0x1a8   : > { %822 = vmax.xlane.f32.xlu2 %v821_v39  ;;  %v966_v43 = vsel %vm772_vm1, %v962_v40, -inf }
 0x1ac   : > { %v814_v41 = vpop.f32.mrf.mxu2 }
 0x1ad   : > { %v959_v42 = vpop.f32.mrf.mxu1 }
 0x1ae   : > { %1103 = vrot.lane.b32.xlu0 %v2271_v10, %s2146_s20 }
 0x1b0   : > { %967 = vmax.xlane.f32.xlu2 %v966_v43 }
 0x20c   : > { %v820_v44 = vpop.xlane.xlu2 %819 }
 0x20d   : > { %v824_v45 = vsub.f32 %v816_v29, %v820_v44  ;;  %v965_v46 = vpop.xlane.xlu0 %964 }
 0x20e   : > { %v969_v47 = vsub.f32 %v961_v31, %v965_v46 }
 0x20f   : > { %v826_v48 = vmul.f32 1.442695, %v824_v45 }
 0x210   : > { %v971_v49 = vmul.f32 1.442695, %v969_v47 }
 0x211   : > { %2076 = vpow2.f32 %v826_v48 }
 0x212   : > { %2078 = vpow2.f32 %v971_v49 }
 0x217   : > { %v2298_v50 = vpop.eup %2076 }
 0x218   : > { %v2300_v51 = vpop.eup %2078  ;;  %v830_v52 = vsel %vm772_vm1, %v2298_v50, 0.0 }
 0x219   : > { %831 = vadd.xlane.f32.xlu0 %v830_v52  ;;  %v975_v53 = vsel %vm772_vm1, %v2300_v51, 0.0 }
 0x21a   : > { %976 = vadd.xlane.f32.xlu1 %v975_v53 }
 0x21b   : > { %v823_v54 = vpop.xlane.xlu2 %822 }
 0x21c   : > { %v825_v55 = vsub.f32 %v817_v37, %v823_v54 }
 0x21e   : > { %v828_v56 = vmul.f32 1.442695, %v825_v55 }
 0x220   : > { %2080 = vpow2.f32 %v828_v56  ;;  %v1104_v57 = vpop.permute.xlu0 %1103 }
 0x221   : > { %v1109_v58 = vsel %vm772_vm1, %v1104_v57, 0 }
 0x222   : > { %1118 = vmatpush.bf16.xpose.msra.mxu2 %v1109_v58 }
 0x223   : > { %v968_v59 = vpop.xlane.xlu2 %967 }
 0x224   : > { %v970_v60 = vsub.f32 %v962_v40, %v968_v59 }
 0x226   : > { %v2307_v61 = vpop.eup %2080  ;;  %v973_v62 = vmul.f32 1.442695, %v970_v60 }
 0x227   : > { %v833_v63 = vsel %vm772_vm1, %v2307_v61, 0.0 }
 0x228   : > { %2082 = vpow2.f32 %v973_v62  ;;  %834 = vadd.xlane.f32.xlu2 %v833_v63 }
 0x22e   : > { %v2311_v0 = vpop.eup %2082 }
 0x22f   : > { %v978_v1 = vsel %vm772_vm1, %v2311_v0, 0.0 }
 0x230   : > { %979 = vadd.xlane.f32.xlu2 %v978_v1 }
 0x233   : > { %1101 = vrot.lane.b32.xlu1 %v2271_v10, %s2147_s21 }
 0x23b   : > { %870 = vrot.lane.b32.xlu1 %v2271_v10, %s2148_s22 }
 0x243   : > { %892 = vrot.lane.b32.xlu1 %v2275_v15, %s2148_s22  ;;  %s2152_s22 = smov 40  }
 0x248   : > { %1037 = vrot.lane.b32.xlu2 %v2275_v15, %s2145_s19 }
 0x24b   : > { %1126 = vrot.lane.b32.xlu1 %v2275_v15, %s2146_s20  ;;  %s680_s20 = scalar_lea.vmem %s2533_s6, %s2547_s29 }
 0x250   : > { %1202 = vrot.lane.b32.xlu2 %v2271_v10, %s2149_s23 }
 0x253   : > { %1124 = vrot.lane.b32.xlu1 %v2275_v15, %s2147_s21  ;;  %s2341_s21 = scalar_lea.vmem %s2541_s14, %s2023_s18  ;;  %s677_s18 = scalar_lea.vmem %s2532_s5, %s2547_s29 }
 0x258   : > { %1294 = vrot.lane.b32.xlu2 %v2275_v15, %s2150_s24 }
 0x260   : > { %1269 = vrot.lane.b32.xlu2 %v2271_v10, %s2151_s25 }
 0x268   : > { %1292 = vrot.lane.b32.xlu2 %v2275_v15, %s2151_s25  ;;  %s674_s25 = scalar_lea.vmem %s2531_s4, %s2547_s29 }
 0x28c   : > { %v832_v4 = vpop.xlane.xlu0 %831 }
 0x28d   : > { %v977_v5 = vpop.xlane.xlu1 %976  ;;  %2084 = vrcp.f32 %v832_v4  ;;  %v847_v16 = vand.u32 2147483648, %v832_v4  ;;  %v845_v19 = vand.u32 2147483647, %v832_v4  ;;  %vm841_vm5 = vweird.f32 %v832_v4 }
 0x28e   : > { %2086 = vrcp.f32 %v977_v5  ;;  %v992_v17 = vand.u32 2147483648, %v977_v5  ;;  %v990_v21 = vand.u32 2147483647, %v977_v5  ;;  %vm986_vm6 = vweird.f32 %v977_v5 }
 0x28f   : > { %v848_v25 = vor.u32 1.1754944e-38, %v847_v16  ;;  %vm846_vm9 = vcmp.eq.f32.partialorder %v845_v19, 8.507059e+37 }
 0x290   : > { %v993_v26 = vor.u32 1.1754944e-38, %v992_v17  ;;  %vm991_vm10 = vcmp.eq.f32.partialorder %v990_v21, 8.507059e+37 }
 0x293   : > { %v2085_v7 = vpop.eup %2084 }
 0x294   : > { %v2087_v9 = vpop.eup %2086  ;;  %v837_v11 = vmul.f32 %v2085_v7, %v832_v4  ;;  %vm842_vm3 = vweird.f32 %v2085_v7 }
 0x295   : > { %v982_v12 = vmul.f32 %v2087_v9, %v977_v5  ;;  %vm987_vm4 = vweird.f32 %v2087_v9  ;;  %vm843_vm7 = vmor %vm841_vm5, %vm842_vm3 }
 0x296   : > { %v838_v13 = vsub.f32 1.0, %v837_v11  ;;  %vm988_vm8 = vmor %vm986_vm6, %vm987_vm4  ;;  %v914_v11 = vld [vmem:[%s2333_s28] sm:$0xf] }
 0x297   : > { %v983_v14 = vsub.f32 1.0, %v982_v12  ;;  %v1085_v12 = vsel %vm875_vm2, %v914_v11, 0 }
 0x298   : > { %v839_v18 = vmul.f32 %v2085_v7, %v838_v13  ;;  %1094 = vmatpush.bf16.msra.mxu1 %v1085_v12 }
 0x299   : > { %v984_v20 = vmul.f32 %v2087_v9, %v983_v14 }
 0x29a   : > { %v840_v22 = vadd.f32 %v2085_v7, %v839_v18 }
 0x29b   : > { %v835_v23 = vpop.xlane.xlu2 %834  ;;  %v985_v24 = vadd.f32 %v2087_v9, %v984_v20 }
 0x29c   : > { %2088 = vrcp.f32 %v835_v23  ;;  %v844_v27 = vsel %vm843_vm7, %v2085_v7, %v840_v22  ;;  %v862_v38 = vand.u32 2147483648, %v835_v23  ;;  %v860_v41 = vand.u32 2147483647, %v835_v23 }
 0x29d   : > { %v989_v28 = vsel %vm988_vm8, %v2087_v9, %v985_v24  ;;  %v849_v29 = vsel %vm846_vm9, %v848_v25, %v844_v27  ;;  %vm856_vm12 = vweird.f32 %v835_v23 }
 0x29e   : > { %v994_v30 = vsel %vm991_vm10, %v993_v26, %v989_v28  ;;  %v850_v31 = vmul.f32 %v2298_v50, %v849_v29  ;;  %v863_v44 = vor.u32 1.1754944e-38, %v862_v38  ;;  %vm861_vm14 = vcmp.eq.f32.partialorder %v860_v41, 8.507059e+37 }
 0x29f   : > { %v995_v32 = vmul.f32 %v2300_v51, %v994_v30 }
 0x2a0   : > { %866 = vst.msk [vmem:[%s2341_s21] sm:$0xff] %vm772_vm1, %v850_v31  ;;  %v868_v57 = vpack.c.bf16 %v850_v31, %v850_v31 }
 0x2a1   : > { %1966 = vst.msk [vmem:[%s2341_s21 + $0x10] sm:$0xff] %vm772_vm1, %v995_v32  ;;  %v1014_v34 = vpack.c.bf16 %v995_v32, %v995_v32 }
 0x2a2   : > { %v2089_v33 = vpop.eup %2088 }
 0x2a3   : > { %v852_v35 = vmul.f32 %v2089_v33, %v835_v23  ;;  %v980_v36 = vpop.xlane.xlu2 %979  ;;  %1968 = vmatmul.msk.bf16.vlgmr.msrb.gmra.mxu2 %vm772_vm1, %v1014_v34  ;;  %vm857_vm11 = vweird.f32 %v2089_v33 }
 0x2a4   : > { %2090 = vrcp.f32 %v980_v36  ;;  %vm858_vm13 = vmor %vm856_vm12, %vm857_vm11  ;;  %v1007_v51 = vand.u32 2147483648, %v980_v36  ;;  %v1005_v54 = vand.u32 2147483647, %v980_v36  ;;  %vm1001_vm3 = vweird.f32 %v980_v36 }
 0x2a5   : > { %v853_v37 = vsub.f32 1.0, %v852_v35  ;;  %v1102_v39 = vpop.permute.xlu1 %1101 }
 0x2a6   : > { %v1008_v58 = vor.u32 1.1754944e-38, %v1007_v51  ;;  %vm1006_vm5 = vcmp.eq.f32.partialorder %v1005_v54, 8.507059e+37 }
 0x2a7   : > { %v854_v40 = vmul.f32 %v2089_v33, %v853_v37 }
 0x2a9   : > { %v855_v42 = vadd.f32 %v2089_v33, %v854_v40 }
 0x2aa   : > { %v2091_v43 = vpop.eup %2090 }
 0x2ab   : > { %v859_v45 = vsel %vm858_vm13, %v2089_v33, %v855_v42  ;;  %v997_v46 = vmul.f32 %v2091_v43, %v980_v36  ;;  %v1038_v47 = vpop.permute.xlu2 %1037  ;;  %vm1002_vm15 = vweird.f32 %v2091_v43 }
 0x2ac   : > { %v864_v48 = vsel %vm861_vm14, %v863_v44, %v859_v45  ;;  %vm1003_vm4 = vmor %vm1001_vm3, %vm1002_vm15  ;;  %v1043_v5 = vsel %vm875_vm2, %v1038_v47, 0 }
 0x2ad   : > { %v998_v49 = vsub.f32 1.0, %v997_v46  ;;  %v865_v50 = vmul.f32 %v2307_v61, %v864_v48  ;;  %v871_v52 = vpop.permute.xlu1 %870 }
 0x2ae   : > { %v877_v55 = vsel %vm875_vm2, %v871_v52, 0 }
 0x2af   : > { %v999_v53 = vmul.f32 %v2091_v43, %v998_v49  ;;  %867 = vst.msk [vmem:[%s2341_s21 + $0x8] sm:$0xff] %vm772_vm1, %v865_v50  ;;  %886 = vmatpush.bf16.msra.mxu3 %v877_v55  ;;  %v869_v7 = vpack.c.bf16 %v865_v50, %v865_v50 }
 0x2b1   : > { %v1000_v56 = vadd.f32 %v2091_v43, %v999_v53 }
 0x2b2   : > { %1962 = vmatmul.msk.bf16.vlgmr.msra.gmra.mxu3 %vm772_vm1, %v868_v57 }
 0x2b3   : > { %v1004_v59 = vsel %vm1003_vm4, %v2091_v43, %v1000_v56  ;;  %v1203_v60 = vpop.permute.xlu2 %1202  ;;  %1973 = vmatmul.msk.bf16.vlgmr.msra.gmra.mxu2 %vm772_vm1, %v1102_v39 }
 0x2b4   : > { %v1009_v61 = vsel %vm1006_vm5, %v1008_v58, %v1004_v59  ;;  %v1208_v62 = vsel %vm875_vm2, %v1203_v60, 0 }
 0x2b5   : > { %v1010_v63 = vmul.f32 %v2311_v0, %v1009_v61  ;;  %1217 = vmatpush.bf16.msrb.mxu0 %v1208_v62  ;;  %v893_v1 = vpop.permute.xlu1 %892 }
 0x2b6   : > { %v898_v4 = vsel %vm875_vm2, %v893_v1, 0 }
 0x2b7   : > { %1967 = vst.msk [vmem:[%s2341_s21 + $0x18] sm:$0xff] %vm772_vm1, %v1010_v63  ;;  %907 = vmatpush.bf16.msrb.mxu3 %v898_v4  ;;  %v1015_v9 = vpack.c.bf16 %v1010_v63, %v1010_v63 }
 0x2bb   : > { %1052 = vmatpush.bf16.msra.mxu3 %v1043_v5  ;;  %v1295_v25 = vpop.permute.xlu2 %1294 }
 0x2bc   : > { %v1300_v28 = vsel %vm772_vm1, %v1295_v25, 0 }
 0x2bd   : > { %v1127_v6 = vpop.permute.xlu1 %1126 }
 0x2be   : > { %v1132_v8 = vsel %vm772_vm1, %v1127_v6, 0 }
 0x2c2   : > { %1963 = vmatmul.msk.bf16.vlgmr.msrb.gmra.mxu3 %vm772_vm1, %v869_v7 }
 0x2c3   : > { %1141 = vmatpush.bf16.xpose.msrb.mxu3 %v1132_v8  ;;  %v1270_v59 = vpop.permute.xlu2 %1269 }
 0x2c5   : > { %v1125_v0 = vpop.permute.xlu1 %1124 }
 0x2cb   : > { %v1293_v60 = vpop.permute.xlu2 %1292 }
 0x2d2   : > { %1969 = vmatmul.msk.bf16.vlgmr.msra.gmra.mxu3 %vm772_vm1, %v1015_v9 }
 0x2e2   : > { %1974 = vmatmul.msk.bf16.vlgmr.msrb.gmra.mxu3 %vm772_vm1, %v1125_v0 }
 0x326   : > { %v1033_v13 = vpop.f32.mrf.mxu2 }
 0x32e   : > { %v1035_v14 = vpop.f32.mrf.mxu2 }
 0x335   : > { %v888_v16 = vpop.f32.mrf.mxu3 }
 0x336   : > { %v1120_v17 = vpop.f32.mrf.mxu2 }
 0x337   : > { %v1147_v18 = vmul.f32 0.35355338, %v1120_v17 }
 0x339   : > { %v1149_v19 = vsel %vm772_vm1, %v1147_v18, -inf }
 0x33a   : > { %1150 = vmax.xlane.f32.xlu1 %v1149_v19 }
 0x33d   : > { %v890_v20 = vpop.f32.mrf.mxu3 }
 0x33e   : > { %v1122_v21 = vpop.f32.mrf.mxu2 }
 0x345   : > { %v909_v22 = vpop.f32.mrf.mxu3 }
 0x346   : > { %v913_v23 = vpack.c.bf16 %v909_v22, %v888_v16 }
 0x348   : > { %1972 = vmatmul.msk.bf16.vlgmr.msra.gmra.mxu1 %vm772_vm1, %v913_v23 }
 0x34d   : > { %v911_v24 = vpop.f32.mrf.mxu3 }
 0x353   : > { %1223 = vrot.lane.b32.xlu1 %v2275_v15, %s2149_s23  ;;  %s688_s23 = scalar_lea.vmem %s2535_s8, %s2547_s29 }
 0x355   : > { %v1054_v26 = vpop.f32.mrf.mxu3 }
 0x356   : > { %v1058_v27 = vpack.c.bf16 %v1054_v26, %v1033_v13 }
 0x358   : > { %1971 = vmatmul.msk.bf16.vlgmr.msra.gmra.mxu0 %vm772_vm1, %v1058_v27 }
 0x359   : > { %1309 = vmatpush.bf16.xpose.msra.mxu0 %v1300_v28 }
 0x35d   : > { %v1056_v29 = vpop.f32.mrf.mxu3 }
 0x365   : > { %v1143_v30 = vpop.f32.mrf.mxu3 }
 0x366   : > { %v1148_v42 = vmul.f32 0.35355338, %v1143_v30 }
 0x368   : > { %v1152_v43 = vsel %vm772_vm1, %v1148_v42, -inf }
 0x36d   : > { %v1145_v31 = vpop.f32.mrf.mxu3 }
 0x3ad   : > { %v1151_v32 = vpop.xlane.xlu1 %1150 }
 0x3ae   : > { %v1155_v33 = vsub.f32 %v1147_v18, %v1151_v32 }
 0x3b0   : > { %v1157_v34 = vmul.f32 1.442695, %v1155_v33 }
 0x3b2   : > { %2092 = vpow2.f32 %v1157_v34 }
 0x3b8   : > { %v2093_v35 = vpop.eup %2092 }
 0x3b9   : > { %v1161_v36 = vsel %vm772_vm1, %v2093_v35, 0.0 }
 0x3ba   : > { %1162 = vadd.xlane.f32.xlu0 %v1161_v36 }
 0x3c5   : > { %v1224_v37 = vpop.permute.xlu1 %1223  ;;  %v1096_v39 = vpop.f32.mrf.mxu1 }
 0x3c6   : > { %v1229_v38 = vsel %vm875_vm2, %v1224_v37, 0 }
 0x3c7   : > { %1238 = vmatpush.bf16.msrb.mxu1 %v1229_v38 }
 0x3ce   : > { %1271 = vrot.lane.b32.xlu0 %v2271_v10, %s2150_s24  ;;  %s696_s24 = scalar_lea.vmem %s2537_s10, %s2547_s29 }
 0x3d5   : > { %v1076_v40 = vpop.f32.mrf.mxu0 }
 0x3d6   : > { %v2378_v41 = vadd.f32 %v1096_v39, %v1076_v40  ;;  %v1979_v40 = vld [vmem:[%s2333_s28 + $0x8] sm:$0xf] }
 0x3dd   : > { %v2388_v5 = vpop.f32.mrf.mxu0 }
 0x3f8   : > { %1153 = vmax.xlane.f32.xlu0 %v1152_v43  ;;  %v2401_v43 = vpop.f32.mrf.mxu1 }
 0x42d   : > { %v1163_v44 = vpop.xlane.xlu0 %1162 }
 0x42e   : > { %2094 = vrcp.f32 %v1163_v44  ;;  %v1178_v48 = vand.u32 2147483648, %v1163_v44  ;;  %v1176_v50 = vand.u32 2147483647, %v1163_v44  ;;  %vm1172_vm7 = vweird.f32 %v1163_v44 }
 0x430   : > { %v1179_v52 = vor.u32 1.1754944e-38, %v1178_v48  ;;  %vm1177_vm9 = vcmp.eq.f32.partialorder %v1176_v50, 8.507059e+37 }
 0x434   : > { %v2095_v45 = vpop.eup %2094 }
 0x435   : > { %v1168_v46 = vmul.f32 %v2095_v45, %v1163_v44  ;;  %vm1173_vm6 = vweird.f32 %v2095_v45 }
 0x436   : > { %vm1174_vm8 = vmor %vm1172_vm7, %vm1173_vm6 }
 0x437   : > { %v1169_v47 = vsub.f32 1.0, %v1168_v46 }
 0x439   : > { %v1170_v49 = vmul.f32 %v2095_v45, %v1169_v47 }
 0x43b   : > { %v1171_v51 = vadd.f32 %v2095_v45, %v1170_v49 }
 0x43d   : > { %v1175_v53 = vsel %vm1174_vm8, %v2095_v45, %v1171_v51 }
 0x43e   : > { %v1180_v54 = vsel %vm1177_vm9, %v1179_v52, %v1175_v53 }
 0x43f   : > { %v1181_v55 = vmul.f32 %v2093_v35, %v1180_v54 }
 0x440   : > { %v1272_v56 = vpop.permute.xlu0 %1271 }
 0x441   : > { %1975 = vst.msk [vmem:[%s2341_s21 + $0x20] sm:$0xff] %vm772_vm1, %v1181_v55  ;;  %v1277_v57 = vsel %vm772_vm1, %v1272_v56, 0  ;;  %v1200_v58 = vpack.c.bf16 %v1181_v55, %v1181_v55 }
 0x442   : > { %1286 = vmatpush.bf16.xpose.msra.mxu3 %v1277_v57 }
 0x443   : > { %1977 = vmatmul.msk.bf16.vlgmr.msrb.gmra.mxu0 %vm772_vm1, %v1200_v58 }
 0x449   : > { %1981 = vmatmul.msk.bf16.vlgmr.msra.gmra.mxu3 %vm772_vm1, %v1270_v59 }
 0x453   : > { %1982 = vmatmul.msk.bf16.vlgmr.msra.gmra.mxu0 %vm772_vm1, %v1293_v60 }
 0x46b   : > { %v1154_v61 = vpop.xlane.xlu0 %1153 }
 0x46c   : > { %v1156_v62 = vsub.f32 %v1148_v42, %v1154_v61  ;;  %v1251_v42 = vsel %vm875_vm2, %v1979_v40, 0 }
 0x46d   : > { %1260 = vmatpush.bf16.msrb.mxu2 %v1251_v42 }
 0x46e   : > { %v1159_v63 = vmul.f32 1.442695, %v1156_v62 }
 0x470   : > { %2096 = vpow2.f32 %v1159_v63 }
 0x476   : > { %v2097_v1 = vpop.eup %2096 }
 0x477   : > { %v1164_v4 = vsel %vm772_vm1, %v2097_v1, 0.0 }
 0x478   : > { %1165 = vadd.xlane.f32.xlu2 %v1164_v4 }
 0x4c0   : > { %v1219_v6 = vpop.f32.mrf.mxu0 }
 0x4c8   : > { %v1221_v7 = vpop.f32.mrf.mxu0 }
 0x4cc   : > { %v1288_v8 = vpop.f32.mrf.mxu3 }
 0x4cd   : > { %v1315_v9 = vmul.f32 0.35355338, %v1288_v8 }
 0x4cf   : > { %v1317_v0 = vsel %vm772_vm1, %v1315_v9, -inf }
 0x4d0   : > { %1318 = vmax.xlane.f32.xlu0 %v1317_v0  ;;  %v1311_v11 = vpop.f32.mrf.mxu0 }
 0x4d1   : > { %v1316_v12 = vmul.f32 0.35355338, %v1311_v11 }
 0x4d3   : > { %v1320_v13 = vsel %vm772_vm1, %v1316_v12, -inf }
 0x4d4   : > { %v1290_v14 = vpop.f32.mrf.mxu3  ;;  %1321 = vmax.xlane.f32.xlu1 %v1320_v13 }
 0x4d8   : > { %v1313_v16 = vpop.f32.mrf.mxu0 }
 0x4eb   : > { %v1166_v17 = vpop.xlane.xlu2 %1165 }
 0x4ec   : > { %2098 = vrcp.f32 %v1166_v17  ;;  %v1193_v21 = vand.u32 2147483648, %v1166_v17  ;;  %v1191_v23 = vand.u32 2147483647, %v1166_v17  ;;  %vm1187_vm11 = vweird.f32 %v1166_v17 }
 0x4ee   : > { %v1194_v25 = vor.u32 1.1754944e-38, %v1193_v21  ;;  %vm1192_vm13 = vcmp.eq.f32.partialorder %v1191_v23, 8.507059e+37 }
 0x4f2   : > { %v2099_v18 = vpop.eup %2098 }
 0x4f3   : > { %v1183_v19 = vmul.f32 %v2099_v18, %v1166_v17  ;;  %vm1188_vm10 = vweird.f32 %v2099_v18 }
 0x4f4   : > { %vm1189_vm12 = vmor %vm1187_vm11, %vm1188_vm10 }
 0x4f5   : > { %v1184_v20 = vsub.f32 1.0, %v1183_v19 }
 0x4f7   : > { %v1185_v22 = vmul.f32 %v2099_v18, %v1184_v20 }
 0x4f9   : > { %v1186_v24 = vadd.f32 %v2099_v18, %v1185_v22 }
 0x4fb   : > { %v1190_v26 = vsel %vm1189_vm12, %v2099_v18, %v1186_v24  ;;  %v1987_v18 = vld [vmem:[%s2333_s28 + $0xc] sm:$0xf] }
 0x4fc   : > { %v1195_v27 = vsel %vm1192_vm13, %v1194_v25, %v1190_v26  ;;  %v1419_v19 = vsel %vm875_vm2, %v1987_v18, 0  ;;  %v2069_v26 = vld [vmem:[%s674_s25] ss:$0 sm:$0xff]  ;;  %s2021_s25 = sshll.u32 %s2547_s29, 5 }
 0x4fd   : > { %v1196_v28 = vmul.f32 %v2097_v1, %v1195_v27  ;;  %1428 = vmatpush.bf16.msrb.mxu3 %v1419_v19  ;;  %s693_s28 = scalar_lea.vmem %s2536_s9, %s2021_s25 }
 0x4ff   : > { %1976 = vst.msk [vmem:[%s2341_s21 + $0x28] sm:$0xff] %vm772_vm1, %v1196_v28  ;;  %v1201_v29 = vpack.c.bf16 %v1196_v28, %v1196_v28 }
 0x501   : > { %1978 = vmatmul.msk.bf16.vlgmr.msrb.gmra.mxu1 %vm772_vm1, %v1201_v29  ;;  %v1099_v29 = vadd.f32 %v2401_v43, %v2388_v5 }
 0x543   : > { %v1319_v30 = vpop.xlane.xlu0 %1318 }
 0x544   : > { %v1323_v31 = vsub.f32 %v1315_v9, %v1319_v30 }
 0x546   : > { %v1325_v32 = vmul.f32 1.442695, %v1323_v31 }
 0x547   : > { %v1322_v33 = vpop.xlane.xlu1 %1321 }
 0x548   : > { %2100 = vpow2.f32 %v1325_v32  ;;  %v1324_v34 = vsub.f32 %v1316_v12, %v1322_v33 }
 0x54a   : > { %v1327_v35 = vmul.f32 1.442695, %v1324_v34 }
 0x54c   : > { %2102 = vpow2.f32 %v1327_v35 }
 0x54e   : > { %v2101_v36 = vpop.eup %2100 }
 0x54f   : > { %v1329_v37 = vsel %vm772_vm1, %v2101_v36, 0.0 }
 0x550   : > { %1330 = vadd.xlane.f32.xlu0 %v1329_v37 }
 0x552   : > { %v2103_v38 = vpop.eup %2102 }
 0x553   : > { %v1332_v39 = vsel %vm772_vm1, %v2103_v38, 0.0 }
 0x554   : > { %1333 = vadd.xlane.f32.xlu2 %v1332_v39 }
 0x564   : > { %1370 = vrot.lane.b32.xlu0 %v2271_v10, %s2152_s22 }
 0x56c   : > { %1391 = vrot.lane.b32.xlu2 %v2275_v15, %s2152_s22  ;;  %s699_s22 = scalar_lea.vmem %s2538_s11, %s2547_s29 }
 0x57e   : > { %v1240_v44 = vpop.f32.mrf.mxu1 }
 0x57f   : > { %v1244_v45 = vpack.c.bf16 %v1240_v44, %v1219_v6 }
 0x581   : > { %1980 = vmatmul.msk.bf16.vlgmr.msrb.gmra.mxu2 %vm772_vm1, %v1244_v45 }
 0x586   : > { %v1242_v46 = vpop.f32.mrf.mxu1 }
 0x5c3   : > { %v1331_v47 = vpop.xlane.xlu0 %1330 }
 0x5c4   : > { %2104 = vrcp.f32 %v1331_v47  ;;  %v1344_v53 = vand.u32 2147483647, %v1331_v47  ;;  %v1346_v54 = vand.u32 2147483648, %v1331_v47  ;;  %vm1340_vm15 = vweird.f32 %v1331_v47 }
 0x5c6   : > { %vm1345_vm4 = vcmp.eq.f32.partialorder %v1344_v53, 8.507059e+37  ;;  %v1347_v59 = vor.u32 1.1754944e-38, %v1346_v54  ;;  %v2027_v53 = vld [vmem:[%s685_s26 + $0x8] sm:$0xff] }
 0x5c7   : > { %v1334_v48 = vpop.xlane.xlu2 %1333  ;;  %1544 = vmatpush.bf16.msrb.mxu0 %v2027_v53 }
 0x5c8   : > { %2106 = vrcp.f32 %v1334_v48  ;;  %v1361_v60 = vand.u32 2147483648, %v1334_v48  ;;  %v1359_v63 = vand.u32 2147483647, %v1334_v48  ;;  %vm1355_vm6 = vweird.f32 %v1334_v48 }
 0x5ca   : > { %v2105_v49 = vpop.eup %2104  ;;  %v1362_v7 = vor.u32 1.1754944e-38, %v1361_v60  ;;  %vm1360_vm8 = vcmp.eq.f32.partialorder %v1359_v63, 8.507059e+37 }
 0x5cb   : > { %v1336_v50 = vmul.f32 %v2105_v49, %v1331_v47  ;;  %vm1341_vm14 = vweird.f32 %v2105_v49 }
 0x5cc   : > { %vm1342_vm3 = vmor %vm1340_vm15, %vm1341_vm14  ;;  %vm1591_vm14 = vcmask 523264  }
 0x5cd   : > { %v1337_v51 = vsub.f32 1.0, %v1336_v50 }
 0x5ce   : > { %v2107_v52 = vpop.eup %2106 }
 0x5cf   : > { %v1338_v10 = vmul.f32 %v2105_v49, %v1337_v51  ;;  %v1351_v15 = vmul.f32 %v2107_v52, %v1334_v48  ;;  %v1392_v55 = vpop.permute.xlu2 %1391  ;;  %vm1356_vm5 = vweird.f32 %v2107_v52 }
 0x5d0   : > { %v1397_v56 = vsel %vm875_vm2, %v1392_v55, 0  ;;  %vm1357_vm7 = vmor %vm1355_vm6, %vm1356_vm5 }
 0x5d1   : > { %v1339_v57 = vadd.f32 %v2105_v49, %v1338_v10  ;;  %v1352_v58 = vsub.f32 1.0, %v1351_v15  ;;  %1406 = vmatpush.bf16.msra.mxu2 %v1397_v56  ;;  %v2026_v15 = vld [vmem:[%s685_s26] sm:$0xff] }
 0x5d2   : > { %1545 = vmatpush.bf16.msrb.mxu0 %v2026_v15 }
 0x5d3   : > { %v1343_v61 = vsel %vm1342_vm3, %v2105_v49, %v1339_v57  ;;  %v1353_v62 = vmul.f32 %v2107_v52, %v1352_v58 }
 0x5d4   : > { %v1348_v1 = vsel %vm1345_vm4, %v1347_v59, %v1343_v61 }
 0x5d5   : > { %v1349_v4 = vmul.f32 %v2101_v36, %v1348_v1  ;;  %v1354_v6 = vadd.f32 %v2107_v52, %v1353_v62 }
 0x5d6   : > { %v1371_v8 = vpop.permute.xlu0 %1370 }
 0x5d7   : > { %1983 = vst.msk [vmem:[%s2341_s21 + $0x30] sm:$0xff] %vm772_vm1, %v1349_v4  ;;  %v1358_v9 = vsel %vm1357_vm7, %v2107_v52, %v1354_v6  ;;  %v1376_v0 = vsel %vm875_vm2, %v1371_v8, 0  ;;  %v1368_v13 = vpack.c.bf16 %v1349_v4, %v1349_v4 }
 0x5d8   : > { %v1363_v11 = vsel %vm1360_vm8, %v1362_v7, %v1358_v9  ;;  %1385 = vmatpush.bf16.msra.mxu1 %v1376_v0 }
 0x5d9   : > { %v1364_v12 = vmul.f32 %v2103_v38, %v1363_v11 }
 0x5db   : > { %1984 = vst.msk [vmem:[%s2341_s21 + $0x38] sm:$0xff] %vm772_vm1, %v1364_v12  ;;  %1985 = vmatmul.msk.bf16.vlgmr.msra.gmra.mxu1 %vm772_vm1, %v1368_v13  ;;  %v1369_v14 = vpack.c.bf16 %v1364_v12, %v1364_v12 }
 0x5dd   : > { %1986 = vmatmul.msk.bf16.vlgmr.msra.gmra.mxu2 %vm772_vm1, %v1369_v14 }
 0x604   : > { %v1262_v16 = vpop.f32.mrf.mxu2 }
 0x605   : > { %v1267_v17 = vadd.f32 %v1262_v16, %v2378_v41 }
 0x60c   : > { %v1264_v20 = vpop.f32.mrf.mxu2 }
 0x60d   : > { %v1268_v31 = vadd.f32 %v1264_v20, %v1099_v29  ;;  %v2030_v29 = vld [vmem:[%s693_s28 + $0x10] sm:$0xff] }
 0x658   : > { %v1387_v21 = vpop.f32.mrf.mxu1 }
 0x660   : > { %v1389_v22 = vpop.f32.mrf.mxu1  ;;  %v1408_v23 = vpop.f32.mrf.mxu2 }
 0x661   : > { %v1412_v24 = vpack.c.bf16 %v1408_v23, %v1387_v21 }
 0x663   : > { %1988 = vmatmul.msk.bf16.vlgmr.msrb.gmra.mxu3 %vm772_vm1, %v1412_v24  ;;  %v2071_v24 = vld [vmem:[%s680_s20] ss:$0 sm:$0xff] }
 0x668   : > { %v1410_v25 = vpop.f32.mrf.mxu2 }
 0x6e6   : > { %v1430_v27 = vpop.f32.mrf.mxu3 }
 0x6e7   : > { %v1435_v28 = vadd.f32 %v1430_v27, %v1267_v17  ;;  %v2070_v17 = vld [vmem:[%s677_s18] ss:$0 sm:$0xff]  ;;  %s711_s18 = scalar_lea.vmem %s2540_s13, %s2250_s17 }
 0x6e9   : > { %v1441_v41 = vadd.f32 %v2069_v26, %v1435_v28 }
 0x6eb   : > { %v2427_v30 = vadd.f32 %v1441_v41, %v2264_v2  ;;  %v2031_v41 = vld [vmem:[%s693_s28 + $0x18] sm:$0xff] }
 0x6ec   : > { %1599 = vmatpush.bf16.msrb.mxu1 %v2031_v41 }
 0x6ed   : > { %v1447_v32 = vsel %vm747_vm0, %v2427_v30, 0.0  ;;  %v1462_v33 = vmul.f32 %v2427_v30, %v2427_v30 }
 0x6ee   : > { %1448 = vadd.xlane.f32.xlu1 %v1447_v32  ;;  %v1432_v34 = vpop.f32.mrf.mxu3 }
 0x6ef   : > { %v1436_v35 = vadd.f32 %v1432_v34, %v1268_v31  ;;  %v1464_v36 = vsel %vm747_vm0, %v1462_v33, 0.0  ;;  %v2028_v31 = vld [vmem:[%s693_s28] sm:$0xff] }
 0x6f0   : > { %1465 = vadd.xlane.f32.xlu2 %v1464_v36  ;;  %1600 = vmatpush.bf16.msrb.mxu1 %v2030_v29  ;;  %v2072_v33 = vld [vmem:[%s688_s23] ss:$0 sm:$0xff] }
 0x6f1   : > { %v1442_v37 = vadd.f32 %v2069_v26, %v1436_v35 }
 0x6f3   : > { %v2435_v5 = vadd.f32 %v1442_v37, %v2266_v3  ;;  %v2153_v3 = vmov 32.0  }
 0x6f4   : > { %2108 = vrcp.f32 %v2153_v3 }
 0x6f5   : > { %v1450_v2 = vsel %vm747_vm0, %v2435_v5, 0.0  ;;  %v1463_v38 = vmul.f32 %v2435_v5, %v2435_v5 }
 0x6f6   : > { %1451 = vadd.xlane.f32.xlu0 %v1450_v2 }
 0x6f7   : > { %v1467_v39 = vsel %vm747_vm0, %v1463_v38, 0.0  ;;  %v2073_v38 = vld [vmem:[%s696_s24] ss:$0 sm:$0xff] }
 0x6f8   : > { %1468 = vadd.xlane.f32.xlu1 %v1467_v39 }
 0x6fa   : > { %v2109_v40 = vpop.eup %2108 }
 0x6fb   : > { %v1454_v42 = vmul.f32 32.0, %v2109_v40  ;;  %vm1458_vm1 = vweird.f32 %v2109_v40 }
 0x6fd   : > { %v1455_v43 = vsub.f32 1.0, %v1454_v42 }
 0x6ff   : > { %v1456_v44 = vmul.f32 %v2109_v40, %v1455_v43 }
 0x701   : > { %v1457_v45 = vadd.f32 %v2109_v40, %v1456_v44 }
 0x703   : > { %v2450_v46 = vsel %vm1458_vm1, %v2109_v40, %v1457_v45 }
 0x761   : > { %v1449_v47 = vpop.xlane.xlu1 %1448 }
 0x762   : > { %v1460_v48 = vmul.f32 %v2450_v46, %v1449_v47 }
 0x763   : > { %v1466_v49 = vpop.xlane.xlu2 %1465 }
 0x764   : > { %v1472_v50 = vmul.f32 %v1460_v48, %v1460_v48  ;;  %v1470_v51 = vmul.f32 %v1466_v49, %v2450_v46  ;;  %v1478_v14 = vsub.f32 %v2427_v30, %v1460_v48  ;;  %v2029_v30 = vld [vmem:[%s693_s28 + $0x8] sm:$0xff] }
 0x765   : > { %1601 = vmatpush.bf16.msrb.mxu1 %v2029_v30 }
 0x766   : > { %v1474_v52 = vsub.f32 %v1470_v51, %v1472_v50 }
 0x768   : > { %v1476_v54 = vmax.f32 %v1474_v52, 0.0 }
 0x769   : > { %v1452_v10 = vpop.xlane.xlu0 %1451  ;;  %1602 = vmatpush.bf16.msrb.mxu1 %v2028_v31 }
 0x76a   : > { %v1480_v55 = vadd.f32 1e-06, %v1476_v54  ;;  %v1461_v56 = vmul.f32 %v2450_v46, %v1452_v10 }
 0x76b   : > { %v1469_v57 = vpop.xlane.xlu1 %1468 }
 0x76c   : > { %2110 = vrsqrt.f32 %v1480_v55  ;;  %v1473_v58 = vmul.f32 %v1461_v56, %v1461_v56  ;;  %v1471_v59 = vmul.f32 %v1469_v57, %v2450_v46  ;;  %vm1488_vm9 = vweird.f32 %v1480_v55 }
 0x76d   : > { %v1479_v20 = vsub.f32 %v2435_v5, %v1461_v56 }
 0x76e   : > { %v1475_v60 = vsub.f32 %v1471_v59, %v1473_v58 }
 0x770   : > { %v1477_v61 = vmax.f32 %v1475_v60, 0.0 }
 0x772   : > { %v2111_v62 = vpop.eup %2110  ;;  %v1481_v1 = vadd.f32 1e-06, %v1477_v61 }
 0x773   : > { %v1483_v63 = vmul.f32 %v2111_v62, %v1480_v55  ;;  %vm1489_vm2 = vweird.f32 %v2111_v62 }
 0x774   : > { %2112 = vrsqrt.f32 %v1481_v1  ;;  %vm1490_vm10 = vmor %vm1488_vm9, %vm1489_vm2  ;;  %vm1498_vm12 = vweird.f32 %v1481_v1 }
 0x775   : > { %v1484_v4 = vmul.f32 %v2111_v62, %v1483_v63 }
 0x777   : > { %v1485_v6 = vmul.f32 0.5, %v1484_v4 }
 0x779   : > { %v1486_v7 = vsub.f32 1.5, %v1485_v6 }
 0x77a   : > { %v2113_v8 = vpop.eup %2112 }
 0x77b   : > { %v1487_v9 = vmul.f32 %v2111_v62, %v1486_v7  ;;  %v1493_v0 = vmul.f32 %v2113_v8, %v1481_v1  ;;  %vm1499_vm11 = vweird.f32 %v2113_v8 }
 0x77c   : > { %vm1500_vm13 = vmor %vm1498_vm12, %vm1499_vm11 }
 0x77d   : > { %v1494_v11 = vmul.f32 %v2113_v8, %v1493_v0  ;;  %v1491_v12 = vsel %vm1490_vm10, %v2111_v62, %v1487_v9 }
 0x77e   : > { %v1502_v18 = vmul.f32 %v1491_v12, %v1478_v14 }
 0x77f   : > { %v1495_v13 = vmul.f32 0.5, %v1494_v11 }
 0x780   : > { %v1507_v22 = vmul.f32 %v2070_v17, %v1502_v18 }
 0x781   : > { %v1496_v16 = vsub.f32 1.5, %v1495_v13  ;;  %v2074_v13 = vld [vmem:[%s699_s22] ss:$0 sm:$0xff] }
 0x782   : > { %v1512_v26 = vadd.f32 %v2071_v24, %v1507_v22 }
 0x783   : > { %v1497_v19 = vmul.f32 %v2113_v8, %v1496_v16 }
 0x785   : > { %v1501_v21 = vsel %vm1500_vm13, %v2113_v8, %v1497_v19 }
 0x786   : > { %v1503_v23 = vmul.f32 %v1501_v21, %v1479_v20 }
 0x788   : > { %v1508_v25 = vmul.f32 %v2070_v17, %v1503_v23 }
 0x78a   : > { %v1513_v27 = vadd.f32 %v2071_v24, %v1508_v25 }
 0x78c   : > { %v1514_v28 = vpack.c.bf16 %v1513_v27, %v1512_v26 }
 0x78e   : > { %1997 = vmatmul.msk.bf16.vlgmr.msrb.gmra.mxu0 %vm747_vm0, %v1514_v28 }
 0x80b   : > { %v1547_v32 = vpop.f32.mrf.mxu0 }
 0x80c   : > { %v1548_v34 = vadd.f32 %v2072_v33, %v1547_v32 }
 0x80e   : > { %v1552_v37 = vmax.f32 %v1548_v34, 0.0 }
 0x813   : > { %v1549_v35 = vpop.f32.mrf.mxu0 }
 0x814   : > { %v1550_v36 = vadd.f32 %v2072_v33, %v1549_v35 }
 0x816   : > { %v1553_v5 = vmax.f32 %v1550_v36, 0.0 }
 0x818   : > { %v1554_v2 = vpack.c.bf16 %v1553_v5, %v1552_v37 }
 0x81a   : > { %2014 = vmatmul.msk.bf16.vlgmr.msrb.gmra.mxu1 %vm1591_vm14, %v1554_v2 }
 0x897   : > { %v1604_v39 = vpop.f32.mrf.mxu1 }
 0x898   : > { %v1605_v3 = vadd.f32 %v2073_v38, %v1604_v39 }
 0x89a   : > { %v1609_v40 = vadd.f32 %v1605_v3, %v1512_v26 }
 0x89c   : > { %v1613_v42 = vsel %vm747_vm0, %v1609_v40, 0.0  ;;  %v1621_v43 = vmul.f32 %v1609_v40, %v1609_v40 }
 0x89d   : > { %1614 = vadd.xlane.f32.xlu1 %v1613_v42 }
 0x89e   : > { %v1623_v47 = vsel %vm747_vm0, %v1621_v43, 0.0 }
 0x89f   : > { %v1606_v44 = vpop.f32.mrf.mxu1 }
 0x8a0   : > { %v1607_v45 = vadd.f32 %v2073_v38, %v1606_v44 }
 0x8a2   : > { %v1610_v48 = vadd.f32 %v1607_v45, %v1513_v27 }
 0x8a4   : > { %v1616_v49 = vsel %vm747_vm0, %v1610_v48, 0.0  ;;  %v1622_v50 = vmul.f32 %v1610_v48, %v1610_v48 }
 0x8a5   : > { %1624 = vadd.xlane.f32.xlu1 %v1623_v47 }
 0x8a6   : > { %v1626_v51 = vsel %vm747_vm0, %v1622_v50, 0.0 }
 0x8ad   : > { %1617 = vadd.xlane.f32.xlu1 %v1616_v49 }
 0x8b5   : > { %1627 = vadd.xlane.f32.xlu1 %v1626_v51 }
 0x910   : > { %v1615_v52 = vpop.xlane.xlu1 %1614 }
 0x911   : > { %v1619_v53 = vmul.f32 %v1615_v52, %v2450_v46 }
 0x913   : > { %v1631_v10 = vmul.f32 %v1619_v53, %v1619_v53  ;;  %v1637_v12 = vsub.f32 %v1609_v40, %v1619_v53 }
 0x918   : > { %v1625_v54 = vpop.xlane.xlu1 %1624 }
 0x919   : > { %v1629_v15 = vmul.f32 %v1625_v54, %v2450_v46 }
 0x91b   : > { %v1633_v55 = vsub.f32 %v1629_v15, %v1631_v10 }
 0x91d   : > { %v1635_v56 = vmax.f32 %v1633_v55, 0.0 }
 0x91f   : > { %v1639_v57 = vadd.f32 1e-06, %v1635_v56 }
 0x920   : > { %v1618_v58 = vpop.xlane.xlu1 %1617 }
 0x921   : > { %2114 = vrsqrt.f32 %v1639_v57  ;;  %v1620_v59 = vmul.f32 %v1618_v58, %v2450_v46  ;;  %vm1647_vm3 = vweird.f32 %v1639_v57 }
 0x923   : > { %v1632_v63 = vmul.f32 %v1620_v59, %v1620_v59  ;;  %v1638_v25 = vsub.f32 %v1610_v48, %v1620_v59 }
 0x927   : > { %v2115_v60 = vpop.eup %2114 }
 0x928   : > { %v1642_v61 = vmul.f32 %v2115_v60, %v1639_v57  ;;  %v1628_v62 = vpop.xlane.xlu1 %1627  ;;  %vm1648_vm15 = vweird.f32 %v2115_v60 }
 0x929   : > { %v1630_v1 = vmul.f32 %v1628_v62, %v2450_v46  ;;  %vm1649_vm4 = vmor %vm1647_vm3, %vm1648_vm15  ;;  %v2075_v46 = vld [vmem:[%s702_s27] ss:$0 sm:$0xff] }
 0x92a   : > { %v1643_v4 = vmul.f32 %v2115_v60, %v1642_v61 }
 0x92b   : > { %v1634_v6 = vsub.f32 %v1630_v1, %v1632_v63 }
 0x92c   : > { %v1644_v7 = vmul.f32 0.5, %v1643_v4 }
 0x92d   : > { %v1636_v8 = vmax.f32 %v1634_v6, 0.0 }
 0x92e   : > { %v1645_v9 = vsub.f32 1.5, %v1644_v7 }
 0x92f   : > { %v1640_v0 = vadd.f32 1e-06, %v1636_v8 }
 0x930   : > { %v1646_v11 = vmul.f32 %v2115_v60, %v1645_v9 }
 0x931   : > { %2116 = vrsqrt.f32 %v1640_v0  ;;  %vm1657_vm6 = vweird.f32 %v1640_v0 }
 0x932   : > { %v1650_v14 = vsel %vm1649_vm4, %v2115_v60, %v1646_v11 }
 0x933   : > { %v1661_v16 = vmul.f32 %v1650_v14, %v1637_v12 }
 0x935   : > { %v1666_v17 = vmul.f32 %v2074_v13, %v1661_v16 }
 0x937   : > { %v2117_v18 = vpop.eup %2116  ;;  %v1671_v19 = vadd.f32 %v2075_v46, %v1666_v17 }
 0x938   : > { %v1652_v20 = vmul.f32 %v2117_v18, %v1640_v0  ;;  %vm1658_vm5 = vweird.f32 %v2117_v18 }
 0x939   : > { %1673 = vst.msk [vmem:[%s711_s18] sm:$0xff] %vm747_vm0, %v1671_v19  ;;  %vm1659_vm7 = vmor %vm1657_vm6, %vm1658_vm5 }
 0x93a   : > { %v1653_v21 = vmul.f32 %v2117_v18, %v1652_v20 }
 0x93c   : > { %v1654_v22 = vmul.f32 0.5, %v1653_v21 }
 0x93e   : > { %v1655_v23 = vsub.f32 1.5, %v1654_v22 }
 0x940   : > { %v1656_v24 = vmul.f32 %v2117_v18, %v1655_v23 }
 0x942   : > { %v1660_v26 = vsel %vm1659_vm7, %v2117_v18, %v1656_v24 }
 0x943   : > { %v1662_v27 = vmul.f32 %v1660_v26, %v1638_v25 }
 0x945   : > { %v1667_v28 = vmul.f32 %v2074_v13, %v1662_v27 }
 0x947   : > { %v1672_v41 = vadd.f32 %v2075_v46, %v1667_v28 }
 0x949   : > { %1674 = vst.msk [vmem:[%s711_s18 + $0x8] sm:$0xff] %vm747_vm0, %v1672_v41 }
 0x94a PF: > { %s25_s15 = sadd.s32 1, %s2140_s15   ;;  %s2542_s29 = smov %s2136_s30 }
 0x94b   : > { %p22_p5 = scmp.ge.s32.totalorder %s25_s15, 5   ;;  %s2543_s30 = smov %s2545_s16 }
 0x94d   :  { %24 = sbr.rel (!%p22_p5) target bundleno = 2 (0x2), region = 156 }

</bundles_post_ra>
